<compile_context>
chip_gen: v6e
topology: v6e:2x2x1
jax: 0.10.0
libtpu: 0.0.40
codegen_flags: <defaults>
</compile_context>

<pallas_src>
import jax
import jax.numpy as jnp
import numpy as np
from jax import lax
from jax.experimental import pallas as pl
from jax.experimental.pallas import tpu as pltpu

# Comfortably under v7x's 64 MiB physical VMEM, above the 32 MiB default.
_VMEM_LIMIT_BYTES = 48 * 1024 * 1024


def _round_up(x, m):
    return (x + m - 1) // m * m


def _target_tile_rows():
    """Generation-aware projection row-tile target (v5e/v6e vs v7x VMEM)."""
    try:
        info = pltpu.get_tpu_info()
        vmem = getattr(info, "vmem_capacity_bytes", None)
        if vmem is not None and vmem < 96 * 1024 * 1024:
            return 256      # v7x: 64 MiB physical VMEM
    except Exception:
        pass
    return 512              # v5e / v6e: 128 MiB VMEM


def _pick_tile_t(T, Bp, V):
    """Largest tile_t that divides T with tile_t*Bp <= the row-tile target."""
    target_rows = _target_tile_rows()
    # keep (rows, V) logits + pre-tiled bias well inside VMEM
    vmem_cap_rows = max(1, (8 * 1024 * 1024) // max(1, 2 * V * 4))
    target_rows = min(target_rows, vmem_cap_rows)
    cap_t = max(1, min(T, target_rows // max(1, Bp)))
    for tt in range(cap_t, 0, -1):
        if T % tt == 0:
            return tt
    return 1


# ----------------------------------------------------------------------------
# Fused multi-layer LSTM: one pallas_call, wavefronted over (layer, time).
# ----------------------------------------------------------------------------
def _make_fused_lstm_kernel(num_layers, seq_len, batch_p, hidden):
    L, T, Bp, H = num_layers, seq_len, batch_p, hidden
    H3 = 3 * H
    n_diag = T + L - 1
    unroll = True if n_diag <= 32 else 8

    def kernel(*refs):
        x_ref, z_ref = refs[0], refs[1]
        n_w = 4 + 3 * (L - 1)
        w_refs = refs[2:2 + n_w]
        y_ref, hn_ref, cn_ref = refs[2 + n_w], refs[3 + n_w], refs[4 + n_w]
        gx_ref = refs[5 + n_w]                              # (T*Bp, 4H) f32

        # Load (small) weights once; values are reused across the whole loop.
        w_ih_x = w_refs[0][...]
        w_ih_z = w_refs[1][...]
        md = w_ih_x.dtype
        w_hh = [w_refs[2][...]]
        bias = [w_refs[3][...]]
        w_ih = [None]
        for l in range(1, L):
            base = 4 + 3 * (l - 1)
            w_ih.append(w_refs[base][...])
            w_hh.append(w_refs[base + 1][...])
            bias.append(w_refs[base + 2][...])

        # Hoisted layer-0 input projection over the whole sequence: one big
        # (T*Bp, E) @ (E, 4H) MXU matmul, off the serial recurrence path.
        gx_ref[...] = jnp.dot(x_ref[...].astype(md), w_ih_x,
                              preferred_element_type=jnp.float32)
        # z is time-invariant: project it once and fold in layer 0's bias.
        gz0 = jnp.dot(z_ref[...].astype(md), w_ih_z,
                      preferred_element_type=jnp.float32) + bias[0]

        def diag_step(d, carry):
            hs, cs = carry
            new_hs, new_cs = [], []
            for l in range(L):
                t = d - l
                valid = jnp.logical_and(t >= 0, t < T)
                t_safe = jnp.clip(t, 0, T - 1)
                h, c = hs[l], cs[l]
                if l == 0:
                    row = pl.multiple_of(t_safe * Bp, Bp)
                    gin = gx_ref[pl.ds(row, Bp), :] + gz0
                else:
                    # Uses layer l-1's *old* carry = h^{l-1}_t (wavefront), so
                    # all L layer updates in this diagonal are independent.
                    gin = jnp.dot(hs[l - 1].astype(md), w_ih[l],
                                  preferred_element_type=jnp.float32) + bias[l]
                gates = gin + jnp.dot(h.astype(md), w_hh[l],
                                      preferred_element_type=jnp.float32)
                # Permuted gate layout [i, f, o | g]: one sigmoid, one tanh.
                sig = jax.nn.sigmoid(gates[:, :H3])
                g_g = jnp.tanh(gates[:, H3:])
                i_g = sig[:, :H]
                f_g = sig[:, H:2 * H]
                o_g = sig[:, 2 * H:H3]
                c_new = f_g * c + i_g * g_g
                h_new = o_g * jnp.tanh(c_new)
                new_hs.append(jnp.where(valid, h_new, h))
                new_cs.append(jnp.where(valid, c_new, c))
                if l == L - 1:
                    @pl.when(valid)
                    def _(h_new=h_new, t_safe=t_safe):
                        row = pl.multiple_of(t_safe * Bp, Bp)
                        y_ref[pl.ds(row, Bp), :] = h_new.astype(y_ref.dtype)
            return tuple(new_hs), tuple(new_cs)

        zeros = tuple(jnp.zeros((Bp, H), jnp.float32) for _ in range(L))
        hs, cs = lax.fori_loop(0, n_diag, diag_step, (zeros, zeros),
                               unroll=unroll)
        for l in range(L):
            hn_ref[l] = hs[l]
            cn_ref[l] = cs[l]

    return kernel


def fused_lstm_pallas(x2d, z_p, lstm_layers, *, seq_len, batch_p, hidden):
    """x2d: (T*Bp, E) time-major rows; z_p: (Bp, latent).

    Returns (y2d (T*Bp, H) in matmul dtype, hn (L,Bp,H) f32, cn (L,Bp,H) f32).
    """
    T, Bp, H = seq_len, batch_p, hidden
    L = len(lstm_layers)
    md = lstm_layers[0]["w_hh"].dtype

    flat = [x2d, z_p]
    in_specs = [pl.BlockSpec(x2d.shape, lambda i: (0, 0)),
                pl.BlockSpec(z_p.shape, lambda i: (0, 0))]
    l0 = lstm_layers[0]
    weights = [l0["w_ih_x"], l0["w_ih_z"], l0["w_hh"], l0["b"]]
    for layer in lstm_layers[1:]:
        weights += [layer["w_ih"], layer["w_hh"], layer["b"]]
    for w in weights:
        flat.append(w)
        in_specs.append(pl.BlockSpec(w.shape, lambda i: (0, 0)))

    kernel = _make_fused_lstm_kernel(L, T, Bp, H)

    y2d, hn, cn = pl.pallas_call(
        kernel,
        out_shape=(
            jax.ShapeDtypeStruct((T * Bp, H), md),
            jax.ShapeDtypeStruct((L, Bp, H), jnp.float32),
            jax.ShapeDtypeStruct((L, Bp, H), jnp.float32),
        ),
        grid_spec=pltpu.PrefetchScalarGridSpec(
            num_scalar_prefetch=0,
            grid=(1,),
            in_specs=in_specs,
            out_specs=[
                pl.BlockSpec((T * Bp, H), lambda i: (0, 0)),
                pl.BlockSpec((L, Bp, H), lambda i: (0, 0, 0)),
                pl.BlockSpec((L, Bp, H), lambda i: (0, 0, 0)),
            ],
            scratch_shapes=[
                pltpu.VMEM((T * Bp, 4 * H), jnp.float32),   # hoisted layer-0 gx
            ],
        ),
        compiler_params=pltpu.CompilerParams(
            dimension_semantics=("arbitrary",),
            vmem_limit_bytes=_VMEM_LIMIT_BYTES,
        ),
    )(*flat)
    return y2d, hn, cn


# ----------------------------------------------------------------------------
# Row-tiled projection + log_softmax:  log_softmax(out @ W_out + src_bias)
# ----------------------------------------------------------------------------
def _proj_logsoftmax_kernel(x_ref, w_ref, bias_ref, o_ref):
    md = w_ref.dtype
    logits = jnp.dot(x_ref[...].astype(md), w_ref[...],
                     preferred_element_type=jnp.float32)     # (tile_r, V) f32
    logits = logits + bias_ref[...]                          # pre-tiled bias
    m = jnp.max(logits, axis=-1, keepdims=True)
    shifted = logits - m
    lse = jnp.log(jnp.sum(jnp.exp(shifted), axis=-1, keepdims=True))
    o_ref[...] = shifted - lse


def proj_logsoftmax_pallas(y2d, w_out, bias_tiled, *, tile_rows):
    """y2d: (T*Bp, H) rows ordered (t, b); bias_tiled: (tile_rows, V)."""
    R, H = y2d.shape
    V = w_out.shape[1]
    grid = (R // tile_rows,)
    return pl.pallas_call(
        _proj_logsoftmax_kernel,
        out_shape=jax.ShapeDtypeStruct((R, V), jnp.float32),
        grid_spec=pltpu.PrefetchScalarGridSpec(
            num_scalar_prefetch=0,
            grid=grid,
            in_specs=[
                pl.BlockSpec((tile_rows, H), lambda i: (i, 0)),
                pl.BlockSpec((H, V), lambda i: (0, 0)),
                pl.BlockSpec((tile_rows, V), lambda i: (0, 0)),
            ],
            out_specs=pl.BlockSpec((tile_rows, V), lambda i: (i, 0)),
        ),
        compiler_params=pltpu.CompilerParams(
            dimension_semantics=("parallel",),   # v7x: shard row tiles on 2 TCs
            vmem_limit_bytes=_VMEM_LIMIT_BYTES,
        ),
    )(y2d, w_out, bias_tiled)


# ----------------------------------------------------------------------------
# Parameters: init (PyTorch-style layout) + one-time prep (permute/split/cast)
# ----------------------------------------------------------------------------
def init_params(key, vocab_size, embed_size, hidden_size, latent_size,
                num_layers):
    ks = jax.random.split(key, 3 + num_layers)
    params = {
        "embedding": 0.1 * jax.random.normal(
            ks[0], (vocab_size, embed_size), jnp.float32),
        "lin_w": 0.1 * jax.random.normal(
            ks[1], (3 * hidden_size, vocab_size), jnp.float32),
        "lin_b": 0.1 * jax.random.normal(
            ks[2], (1, vocab_size), jnp.float32),
        "lstm": [],
    }
    in_size = embed_size + latent_size
    for l in range(num_layers):
        k0, k1, k2, k3 = jax.random.split(ks[3 + l], 4)
        w_ih = 0.1 * jax.random.normal(
            k0, (in_size, 4 * hidden_size), jnp.float32)
        w_hh = 0.1 * jax.random.normal(
            k1, (hidden_size, 4 * hidden_size), jnp.float32)
        b_ih = 0.1 * jax.random.normal(k2, (4 * hidden_size,), jnp.float32)
        b_hh = 0.1 * jax.random.normal(k3, (4 * hidden_size,), jnp.float32)
        params["lstm"].append(
            (w_ih, w_hh, (b_ih + b_hh).reshape(1, 4 * hidden_size)))
        in_size = hidden_size
    return params


def _permute_gates(w):
    """Reorder gate columns from PyTorch [i,f,g,o] to kernel [i,f,o,g]."""
    H = w.shape[-1] // 4
    return jnp.concatenate(
        [w[..., :2 * H], w[..., 3 * H:], w[..., 2 * H:3 * H]], axis=-1)


def prepare_params(params, matmul_dtype=jnp.float32):
    """One-time prep (outside jit): gate permutation, layer-0 x/z split,
    output-linear split, and matmul-dtype casts."""
    md = matmul_dtype
    E = params["embedding"].shape[1]
    H = params["lstm"][0][1].shape[0]
    lstm = []
    for idx, (w_ih, w_hh, b) in enumerate(params["lstm"]):
        w_ih_p = _permute_gates(w_ih).astype(md)
        w_hh_p = _permute_gates(w_hh).astype(md)
        b_p = _permute_gates(b)                                # stays f32
        if idx == 0:
            lstm.append({"w_ih_x": w_ih_p[:E], "w_ih_z": w_ih_p[E:],
                         "w_hh": w_hh_p, "b": b_p})
        else:
            lstm.append({"w_ih": w_ih_p, "w_hh": w_hh_p, "b": b_p})
    lin_w = params["lin_w"]
    return {
        "embedding": params["embedding"],
        "lstm": lstm,
        "w_out": lin_w[:H].astype(md),     # acts on the LSTM output
        "w_src": lin_w[H:].astype(md),     # acts on h_src (time-invariant)
        "lin_b": params["lin_b"],
    }


# ----------------------------------------------------------------------------
# Full forward
# ----------------------------------------------------------------------------
@jax.jit
def basic_decoder_forward(prepared, trg, z, encoded_src):
    """trg: (T, B) int32; z: (B, latent); encoded_src: (S, B, 2H)."""
    T, B = trg.shape
    E = prepared["embedding"].shape[1]
    H = prepared["lstm"][0]["w_hh"].shape[0]
    V = prepared["w_out"].shape[1]
    md = prepared["w_out"].dtype

    # Sublane-aligned batch: 8 rows for f32 state, 16 when matmuls run bf16.
    sub = 16 if md == jnp.bfloat16 else 8
    Bp = _round_up(B, sub)
    pad_b = Bp - B

    # Embedding lookup (gather): plain-JAX glue.
    x = jnp.take(prepared["embedding"], trg, axis=0)          # (T, B, E)
    # TODO(synk): Bernoulli word-dropout mask (training) not ported;
    # word_dpt=0 -> all-ones mask (identity).
    h_src = encoded_src[-1, :, :]                             # (B, 2H)
    if pad_b:
        x = jnp.pad(x, ((0, 0), (0, pad_b), (0, 0)))
        z_p = jnp.pad(z, ((0, pad_b), (0, 0)))
        h_src_p = jnp.pad(h_src, ((0, pad_b), (0, 0)))
    else:
        z_p, h_src_p = z, h_src
    x2d = x.reshape(T * Bp, E)

    y2d, hn, cn = fused_lstm_pallas(
        x2d, z_p, prepared["lstm"], seq_len=T, batch_p=Bp, hidden=H)

    # self.dropout(output): identity (eval mode).
    # src contribution of the output Linear: computed once for all timesteps,
    # folded into XLA (tiny (Bp,2H)@(2H,V) matmul), then pre-tiled so the
    # projection kernel adds it with a single unmasked vadd per tile.
    src_bias = (jnp.dot(h_src_p.astype(md), prepared["w_src"],
                        preferred_element_type=jnp.float32)
                + prepared["lin_b"])                          # (Bp, V) f32

    tile_t = _pick_tile_t(T, Bp, V)
    bias_tiled = jnp.tile(src_bias, (tile_t, 1))              # (tile_t*Bp, V)

    logp2d = proj_logsoftmax_pallas(
        y2d, prepared["w_out"], bias_tiled, tile_rows=tile_t * Bp)

    logp = logp2d.reshape(T, Bp, V)[:, :B, :]
    return logp, (hn[:, :B, :], cn[:, :B, :])


# ----------------------------------------------------------------------------
# Pure-JAX reference for verification (uses the original PyTorch-layout params)
# ----------------------------------------------------------------------------
def reference_forward(params, trg, z, encoded_src):
    T, B = trg.shape
    x = jnp.take(params["embedding"], trg, axis=0)
    zt = jnp.broadcast_to(z[None, :, :], (T,) + z.shape)
    x = jnp.concatenate([x, zt], axis=2)

    out = x
    hs, cs = [], []
    for (w_ih, w_hh, b) in params["lstm"]:
        H = w_hh.shape[0]

        def step(carry, xt, w_ih=w_ih, w_hh=w_hh, b=b, H=H):
            h, c = carry
            g = xt @ w_ih + h @ w_hh + b[0]
            i = jax.nn.sigmoid(g[:, 0 * H:1 * H])
            f = jax.nn.sigmoid(g[:, 1 * H:2 * H])
            gg = jnp.tanh(g[:, 2 * H:3 * H])
            o = jax.nn.sigmoid(g[:, 3 * H:4 * H])
            c = f * c + i * gg
            h = o * jnp.tanh(c)
            return (h, c), h

        init = (jnp.zeros((B, H), jnp.float32), jnp.zeros((B, H), jnp.float32))
        (hn, cn), ys = jax.lax.scan(step, init, out)
        out = ys
        hs.append(hn)
        cs.append(cn)

    h_src = encoded_src[-1]
    cat = jnp.concatenate(
        [out, jnp.broadcast_to(h_src[None], (T,) + h_src.shape)], axis=2)
    logits = cat @ params["lin_w"] + params["lin_b"][0]
    return jax.nn.log_softmax(logits, axis=2), (jnp.stack(hs), jnp.stack(cs))


if __name__ == "__main__":
    vocab_size, embed_size, hidden_size = 128, 32, 32
    latent_size, num_layers = 16, 2
    trg_len, batch, src_len = 8, 4, 6

    key = jax.random.PRNGKey(0)
    kp, kt, kz, ke = jax.random.split(key, 4)
    params = init_params(kp, vocab_size, embed_size, hidden_size,
                         latent_size, num_layers)
    trg = jax.random.randint(kt, (trg_len, batch), 0, vocab_size, jnp.int32)
    z = jax.random.normal(kz, (batch, latent_size), jnp.float32)
    encoded_src = jax.random.normal(
        ke, (src_len, batch, 2 * hidden_size), jnp.float32)

    # f32 matmul path: tight check against the pure-JAX reference.
    prepared_f32 = prepare_params(params, jnp.float32)
    logp, (hn, cn) = basic_decoder_forward(prepared_f32, trg, z, encoded_src)
    jax.block_until_ready(logp)

    ref_logp, (ref_hn, ref_cn) = reference_forward(params, trg, z, encoded_src)
    np.testing.assert_allclose(np.asarray(logp), np.asarray(ref_logp),
                               rtol=1e-5, atol=2e-5)
    np.testing.assert_allclose(np.asarray(hn), np.asarray(ref_hn),
                               rtol=1e-5, atol=2e-5)
    np.testing.assert_allclose(np.asarray(cn), np.asarray(ref_cn),
                               rtol=1e-5, atol=2e-5)

    # bf16 matmul inputs / f32 accumulation path: loose check (exercises the
    # reduced-precision MXU path; h/c state and softmax stay f32).
    prepared_bf16 = prepare_params(params, jnp.bfloat16)
    logp16, _ = basic_decoder_forward(prepared_bf16, trg, z, encoded_src)
    jax.block_until_ready(logp16)
    np.testing.assert_allclose(np.asarray(logp16), np.asarray(ref_logp),
                               rtol=0.0, atol=0.1)

    assert logp.shape == (trg_len, batch, vocab_size)
    assert hn.shape == (num_layers, batch, hidden_size)
    print("KERNEL_OK")
</pallas_src>

<mosaic_0001>
module attributes {stable_mosaic.version = 11 : i64} {
  func.func @_proj_logsoftmax_kernel(%arg0: i32, %arg1: memref<64x32xf32, #tpu.memory_space<vmem>>, %arg2: memref<32x128xf32, #tpu.memory_space<vmem>>, %arg3: memref<64x128xf32, #tpu.memory_space<vmem>>, %arg4: memref<64x128xf32, #tpu.memory_space<vmem>>) attributes {dimension_semantics = [#tpu.dimension_semantics<parallel>], iteration_bounds = array<i64: 1>, scalar_prefetch = 0 : i64, scratch_operands = 0 : i64, tpu.core_type = #tpu.core_type<tc>, window_params = [{transform_indices = @transform_0, window_bounds = array<i64: 64, 32>}, {pipeline_mode = #tpu.pipeline_mode<synchronous>, transform_indices = @transform_1, window_bounds = array<i64: 32, 128>}, {pipeline_mode = #tpu.pipeline_mode<synchronous>, transform_indices = @transform_2, window_bounds = array<i64: 64, 128>}, {transform_indices = @transform_3, window_bounds = array<i64: 64, 128>}]} {
    %c0 = arith.constant 0 : index
    %c0_0 = arith.constant 0 : index
    %0 = vector.load %arg1[%c0, %c0_0] : memref<64x32xf32, #tpu.memory_space<vmem>>, vector<64x32xf32>
    %c0_1 = arith.constant 0 : index
    %c0_2 = arith.constant 0 : index
    %1 = vector.load %arg2[%c0_1, %c0_2] : memref<32x128xf32, #tpu.memory_space<vmem>>, vector<32x128xf32>
    %cst = arith.constant dense<0.000000e+00> : vector<64x128xf32>
    %2 = tpu.matmul %0, %1, %cst {dimension_numbers = #tpu.dot_dimension_numbers<[1], [0], [0], [1], [0, 0, 1, 1], [], []>} : vector<64x32xf32>, vector<32x128xf32>, vector<64x128xf32> -> vector<64x128xf32>
    %c0_3 = arith.constant 0 : index
    %c0_4 = arith.constant 0 : index
    %3 = vector.load %arg3[%c0_3, %c0_4] : memref<64x128xf32, #tpu.memory_space<vmem>>, vector<64x128xf32>
    %4 = arith.addf %2, %3 : vector<64x128xf32>
    %cst_5 = arith.constant dense<0xFF800000> : vector<64xf32>
    %5 = vector.multi_reduction <maximumf>, %4, %cst_5 [1] : vector<64x128xf32> to vector<64xf32>
    %6 = vector.shape_cast %5 : vector<64xf32> to vector<64x1xf32>
    %7 = vector.broadcast %6 : vector<64x1xf32> to vector<64x128xf32>
    %8 = arith.subf %4, %7 : vector<64x128xf32>
    %9 = math.exp %8 : vector<64x128xf32>
    %cst_6 = arith.constant dense<0.000000e+00> : vector<64xf32>
    %10 = vector.multi_reduction <add>, %9, %cst_6 [1] : vector<64x128xf32> to vector<64xf32>
    %11 = vector.shape_cast %10 : vector<64xf32> to vector<64x1xf32>
    %12 = math.log %11 : vector<64x1xf32>
    %13 = vector.broadcast %12 : vector<64x1xf32> to vector<64x128xf32>
    %14 = arith.subf %8, %13 : vector<64x128xf32>
    %c0_7 = arith.constant 0 : index
    %c0_8 = arith.constant 0 : index
    %15 = vector.load %arg4[%c0_7, %c0_8] : memref<64x128xf32, #tpu.memory_space<vmem>>, vector<64x128xf32>
    tpu.vector_store %arg4[%c0_7, %c0_8], %14 {strides = array<i32>} : memref<64x128xf32, #tpu.memory_space<vmem>>, vector<64x128xf32>,
    return
  }
  func.func @transform_0(%arg0: i32) -> (i32, i32) {
    %c0_i32 = arith.constant 0 : i32
    %c0_i32_0 = arith.constant 0 : i32
    return %arg0, %c0_i32 : i32, i32
  }
  func.func @transform_1(%arg0: i32) -> (i32, i32) {
    %c0_i32 = arith.constant 0 : i32
    %c0_i32_0 = arith.constant 0 : i32
    %c0_i32_1 = arith.constant 0 : i32
    return %c0_i32, %c0_i32_0 : i32, i32
  }
  func.func @transform_2(%arg0: i32) -> (i32, i32) {
    %c0_i32 = arith.constant 0 : i32
    %c0_i32_0 = arith.constant 0 : i32
    %c0_i32_1 = arith.constant 0 : i32
    return %c0_i32, %c0_i32_0 : i32, i32
  }
  func.func @transform_3(%arg0: i32) -> (i32, i32) {
    %c0_i32 = arith.constant 0 : i32
    %c0_i32_0 = arith.constant 0 : i32
    return %arg0, %c0_i32 : i32, i32
  }
}

module attributes {stable_mosaic.version = 11 : i64} {
  func.func @kernel(%arg0: i32, %arg1: memref<64x32xf32, #tpu.memory_space<vmem>>, %arg2: memref<8x16xf32, #tpu.memory_space<vmem>>, %arg3: memref<32x128xf32, #tpu.memory_space<vmem>>, %arg4: memref<16x128xf32, #tpu.memory_space<vmem>>, %arg5: memref<32x128xf32, #tpu.memory_space<vmem>>, %arg6: memref<1x128xf32, #tpu.memory_space<vmem>>, %arg7: memref<32x128xf32, #tpu.memory_space<vmem>>, %arg8: memref<32x128xf32, #tpu.memory_space<vmem>>, %arg9: memref<1x128xf32, #tpu.memory_space<vmem>>, %arg10: memref<64x32xf32, #tpu.memory_space<vmem>>, %arg11: memref<2x8x32xf32, #tpu.memory_space<vmem>>, %arg12: memref<2x8x32xf32, #tpu.memory_space<vmem>>, %arg13: memref<64x128xf32, #tpu.memory_space<vmem>>) attributes {dimension_semantics = [#tpu.dimension_semantics<arbitrary>], iteration_bounds = array<i64: 1>, scalar_prefetch = 0 : i64, scratch_operands = 1 : i64, tpu.core_type = #tpu.core_type<tc>, window_params = [{pipeline_mode = #tpu.pipeline_mode<synchronous>, transform_indices = @transform_0, window_bounds = array<i64: 64, 32>}, {pipeline_mode = #tpu.pipeline_mode<synchronous>, transform_indices = @transform_1, window_bounds = array<i64: 8, 16>}, {pipeline_mode = #tpu.pipeline_mode<synchronous>, transform_indices = @transform_2, window_bounds = array<i64: 32, 128>}, {pipeline_mode = #tpu.pipeline_mode<synchronous>, transform_indices = @transform_3, window_bounds = array<i64: 16, 128>}, {pipeline_mode = #tpu.pipeline_mode<synchronous>, transform_indices = @transform_4, window_bounds = array<i64: 32, 128>}, {pipeline_mode = #tpu.pipeline_mode<synchronous>, transform_indices = @transform_5, window_bounds = array<i64: 1, 128>}, {pipeline_mode = #tpu.pipeline_mode<synchronous>, transform_indices = @transform_6, window_bounds = array<i64: 32, 128>}, {pipeline_mode = #tpu.pipeline_mode<synchronous>, transform_indices = @transform_7, window_bounds = array<i64: 32, 128>}, {pipeline_mode = #tpu.pipeline_mode<synchronous>, transform_indices = @transform_8, window_bounds = array<i64: 1, 128>}, {pipeline_mode = #tpu.pipeline_mode<synchronous>, transform_indices = @transform_9, window_bounds = array<i64: 64, 32>}, {pipeline_mode = #tpu.pipeline_mode<synchronous>, transform_indices = @transform_10, window_bounds = array<i64: 2, 8, 32>}, {pipeline_mode = #tpu.pipeline_mode<synchronous>, transform_indices = @transform_11, window_bounds = array<i64: 2, 8, 32>}]} {
    %c0 = arith.constant 0 : index
    %c0_0 = arith.constant 0 : index
    %0 = vector.load %arg3[%c0, %c0_0] : memref<32x128xf32, #tpu.memory_space<vmem>>, vector<32x128xf32>
    %c0_1 = arith.constant 0 : index
    %c0_2 = arith.constant 0 : index
    %1 = vector.load %arg4[%c0_1, %c0_2] : memref<16x128xf32, #tpu.memory_space<vmem>>, vector<16x128xf32>
    %c0_3 = arith.constant 0 : index
    %c0_4 = arith.constant 0 : index
    %2 = vector.load %arg5[%c0_3, %c0_4] : memref<32x128xf32, #tpu.memory_space<vmem>>, vector<32x128xf32>
    %c0_5 = arith.constant 0 : index
    %c0_6 = arith.constant 0 : index
    %3 = vector.load %arg6[%c0_5, %c0_6] : memref<1x128xf32, #tpu.memory_space<vmem>>, vector<1x128xf32>
    %c0_7 = arith.constant 0 : index
    %c0_8 = arith.constant 0 : index
    %4 = vector.load %arg7[%c0_7, %c0_8] : memref<32x128xf32, #tpu.memory_space<vmem>>, vector<32x128xf32>
    %c0_9 = arith.constant 0 : index
    %c0_10 = arith.constant 0 : index
    %5 = vector.load %arg8[%c0_9, %c0_10] : memref<32x128xf32, #tpu.memory_space<vmem>>, vector<32x128xf32>
    %c0_11 = arith.constant 0 : index
    %c0_12 = arith.constant 0 : index
    %6 = vector.load %arg9[%c0_11, %c0_12] : memref<1x128xf32, #tpu.memory_space<vmem>>, vector<1x128xf32>
    %c0_13 = arith.constant 0 : index
    %c0_14 = arith.constant 0 : index
    %7 = vector.load %arg1[%c0_13, %c0_14] : memref<64x32xf32, #tpu.memory_space<vmem>>, vector<64x32xf32>
    %cst = arith.constant dense<0.000000e+00> : vector<64x128xf32>
    %8 = tpu.matmul %7, %0, %cst {dimension_numbers = #tpu.dot_dimension_numbers<[1], [0], [0], [1], [0, 0, 1, 1], [], []>} : vector<64x32xf32>, vector<32x128xf32>, vector<64x128xf32> -> vector<64x128xf32>
    %c0_15 = arith.constant 0 : index
    %c0_16 = arith.constant 0 : index
    %9 = vector.load %arg13[%c0_15, %c0_16] : memref<64x128xf32, #tpu.memory_space<vmem>>, vector<64x128xf32>
    tpu.vector_store %arg13[%c0_15, %c0_16], %8 {strides = array<i32>} : memref<64x128xf32, #tpu.memory_space<vmem>>, vector<64x128xf32>,
    %c0_17 = arith.constant 0 : index
    %c0_18 = arith.constant 0 : index
    %10 = vector.load %arg2[%c0_17, %c0_18] : memref<8x16xf32, #tpu.memory_space<vmem>>, vector<8x16xf32>
    %cst_19 = arith.constant dense<0.000000e+00> : vector<8x128xf32>
    %11 = tpu.matmul %10, %1, %cst_19 {dimension_numbers = #tpu.dot_dimension_numbers<[1], [0], [0], [1], [0, 0, 1, 1], [], []>} : vector<8x16xf32>, vector<16x128xf32>, vector<8x128xf32> -> vector<8x128xf32>
    %12 = vector.broadcast %3 : vector<1x128xf32> to vector<8x128xf32>
    %13 = arith.addf %11, %12 : vector<8x128xf32>
    %cst_20 = arith.constant 0.000000e+00 : f32
    %14 = vector.broadcast %cst_20 : f32 to vector<8x32xf32>
    %cst_21 = arith.constant 0.000000e+00 : f32
    %15 = vector.broadcast %cst_21 : f32 to vector<8x32xf32>
    %c0_i32 = arith.constant 0 : i32
    %c0_i32_22 = arith.constant 0 : i32
    %16 = arith.subi %c0_i32, %c0_i32_22 : i32
    %c0_i32_23 = arith.constant 0 : i32
    %17 = arith.cmpi sge, %16, %c0_i32_23 : i32
    %c8_i32 = arith.constant 8 : i32
    %18 = arith.cmpi slt, %16, %c8_i32 : i32
    %19 = arith.andi %17, %18 : i1
    %c0_i32_24 = arith.constant 0 : i32
    %c7_i32 = arith.constant 7 : i32
    %20 = arith.maxsi %c0_i32_24, %16 : i32
    %21 = arith.minsi %c7_i32, %20 : i32
    %c8_i32_25 = arith.constant 8 : i32
    %22 = arith.muli %21, %c8_i32_25 : i32
    %23 = tpu.assume_multiple %22, 8 : i32
    %24 = arith.index_cast %23 : i32 to index
    %c0_26 = arith.constant 0 : index
    %25 = vector.load %arg13[%24, %c0_26] : memref<64x128xf32, #tpu.memory_space<vmem>>, vector<8x128xf32>
    %26 = arith.addf %25, %13 : vector<8x128xf32>
    %cst_27 = arith.constant dense<0.000000e+00> : vector<8x128xf32>
    %27 = tpu.matmul %14, %2, %cst_27 {dimension_numbers = #tpu.dot_dimension_numbers<[1], [0], [0], [1], [0, 0, 1, 1], [], []>} : vector<8x32xf32>, vector<32x128xf32>, vector<8x128xf32> -> vector<8x128xf32>
    %28 = arith.addf %26, %27 : vector<8x128xf32>
    %29 = vector.extract_strided_slice %28 {offsets = [0, 0], sizes = [8, 96], strides = [1, 1]} : vector<8x128xf32> to vector<8x96xf32>
    %30 = arith.negf %29 : vector<8x96xf32>
    %31 = math.exp %30 : vector<8x96xf32>
    %cst_28 = arith.constant 1.000000e+00 : f32
    %32 = vector.broadcast %cst_28 : f32 to vector<8x96xf32>
    %33 = arith.addf %32, %31 : vector<8x96xf32>
    %34 = arith.divf %32, %33 : vector<8x96xf32>
    %35 = vector.extract_strided_slice %28 {offsets = [0, 96], sizes = [8, 32], strides = [1, 1]} : vector<8x128xf32> to vector<8x32xf32>
    %36 = math.tanh %35 : vector<8x32xf32>
    %37 = vector.extract_strided_slice %34 {offsets = [0, 0], sizes = [8, 32], strides = [1, 1]} : vector<8x96xf32> to vector<8x32xf32>
    %38 = vector.extract_strided_slice %34 {offsets = [0, 32], sizes = [8, 32], strides = [1, 1]} : vector<8x96xf32> to vector<8x32xf32>
    %39 = vector.extract_strided_slice %34 {offsets = [0, 64], sizes = [8, 32], strides = [1, 1]} : vector<8x96xf32> to vector<8x32xf32>
    %40 = arith.mulf %38, %14 : vector<8x32xf32>
    %41 = arith.mulf %37, %36 : vector<8x32xf32>
    %42 = arith.addf %40, %41 : vector<8x32xf32>
    %43 = math.tanh %42 : vector<8x32xf32>
    %44 = arith.mulf %39, %43 : vector<8x32xf32>
    %45 = arith.select %19, %44, %14 : vector<8x32xf32>
    %46 = arith.select %19, %42, %14 : vector<8x32xf32>
    %c1_i32 = arith.constant 1 : i32
    %47 = arith.subi %c0_i32, %c1_i32 : i32
    %c0_i32_29 = arith.constant 0 : i32
    %48 = arith.cmpi sge, %47, %c0_i32_29 : i32
    %c8_i32_30 = arith.constant 8 : i32
    %49 = arith.cmpi slt, %47, %c8_i32_30 : i32
    %50 = arith.andi %48, %49 : i1
    %c0_i32_31 = arith.constant 0 : i32
    %c7_i32_32 = arith.constant 7 : i32
    %51 = arith.maxsi %c0_i32_31, %47 : i32
    %52 = arith.minsi %c7_i32_32, %51 : i32
    %cst_33 = arith.constant dense<0.000000e+00> : vector<8x128xf32>
    %53 = tpu.matmul %14, %4, %cst_33 {dimension_numbers = #tpu.dot_dimension_numbers<[1], [0], [0], [1], [0, 0, 1, 1], [], []>} : vector<8x32xf32>, vector<32x128xf32>, vector<8x128xf32> -> vector<8x128xf32>
    %54 = vector.broadcast %6 : vector<1x128xf32> to vector<8x128xf32>
    %55 = arith.addf %53, %54 : vector<8x128xf32>
    %cst_34 = arith.constant dense<0.000000e+00> : vector<8x128xf32>
    %56 = tpu.matmul %15, %5, %cst_34 {dimension_numbers = #tpu.dot_dimension_numbers<[1], [0], [0], [1], [0, 0, 1, 1], [], []>} : vector<8x32xf32>, vector<32x128xf32>, vector<8x128xf32> -> vector<8x128xf32>
    %57 = arith.addf %55, %56 : vector<8x128xf32>
    %58 = vector.extract_strided_slice %57 {offsets = [0, 0], sizes = [8, 96], strides = [1, 1]} : vector<8x128xf32> to vector<8x96xf32>
    %59 = arith.negf %58 : vector<8x96xf32>
    %60 = math.exp %59 : vector<8x96xf32>
    %cst_35 = arith.constant 1.000000e+00 : f32
    %61 = vector.broadcast %cst_35 : f32 to vector<8x96xf32>
    %62 = arith.addf %61, %60 : vector<8x96xf32>
    %63 = arith.divf %61, %62 : vector<8x96xf32>
    %64 = vector.extract_strided_slice %57 {offsets = [0, 96], sizes = [8, 32], strides = [1, 1]} : vector<8x128xf32> to vector<8x32xf32>
    %65 = math.tanh %64 : vector<8x32xf32>
    %66 = vector.extract_strided_slice %63 {offsets = [0, 0], sizes = [8, 32], strides = [1, 1]} : vector<8x96xf32> to vector<8x32xf32>
    %67 = vector.extract_strided_slice %63 {offsets = [0, 32], sizes = [8, 32], strides = [1, 1]} : vector<8x96xf32> to vector<8x32xf32>
    %68 = vector.extract_strided_slice %63 {offsets = [0, 64], sizes = [8, 32], strides = [1, 1]} : vector<8x96xf32> to vector<8x32xf32>
    %69 = arith.mulf %67, %15 : vector<8x32xf32>
    %70 = arith.mulf %66, %65 : vector<8x32xf32>
    %71 = arith.addf %69, %70 : vector<8x32xf32>
    %72 = math.tanh %71 : vector<8x32xf32>
    %73 = arith.mulf %68, %72 : vector<8x32xf32>
    %74 = arith.select %50, %73, %15 : vector<8x32xf32>
    %75 = arith.select %50, %71, %15 : vector<8x32xf32>
    %76 = arith.extui %50 : i1 to i32
    %c0_i32_36 = arith.constant 0 : i32
    %77 = arith.cmpi ne, %76, %c0_i32_36 : i32
    scf.if %77 {
      %c8_i32_195 = arith.constant 8 : i32
      %586 = arith.muli %52, %c8_i32_195 : i32
      %587 = tpu.assume_multiple %586, 8 : i32
      %588 = arith.index_cast %587 : i32 to index
      %c0_196 = arith.constant 0 : index
      %589 = vector.load %arg10[%588, %c0_196] : memref<64x32xf32, #tpu.memory_space<vmem>>, vector<8x32xf32>
      tpu.vector_store %arg10[%588, %c0_196], %73 {strides = array<i32>} : memref<64x32xf32, #tpu.memory_space<vmem>>, vector<8x32xf32>,
    } else {
    }
    %c1_i32_37 = arith.constant 1 : i32
    %c0_i32_38 = arith.constant 0 : i32
    %78 = arith.subi %c1_i32_37, %c0_i32_38 : i32
    %c0_i32_39 = arith.constant 0 : i32
    %79 = arith.cmpi sge, %78, %c0_i32_39 : i32
    %c8_i32_40 = arith.constant 8 : i32
    %80 = arith.cmpi slt, %78, %c8_i32_40 : i32
    %81 = arith.andi %79, %80 : i1
    %c0_i32_41 = arith.constant 0 : i32
    %c7_i32_42 = arith.constant 7 : i32
    %82 = arith.maxsi %c0_i32_41, %78 : i32
    %83 = arith.minsi %c7_i32_42, %82 : i32
    %c8_i32_43 = arith.constant 8 : i32
    %84 = arith.muli %83, %c8_i32_43 : i32
    %85 = tpu.assume_multiple %84, 8 : i32
    %86 = arith.index_cast %85 : i32 to index
    %c0_44 = arith.constant 0 : index
    %87 = vector.load %arg13[%86, %c0_44] : memref<64x128xf32, #tpu.memory_space<vmem>>, vector<8x128xf32>
    %88 = arith.addf %87, %13 : vector<8x128xf32>
    %cst_45 = arith.constant dense<0.000000e+00> : vector<8x128xf32>
    %89 = tpu.matmul %45, %2, %cst_45 {dimension_numbers = #tpu.dot_dimension_numbers<[1], [0], [0], [1], [0, 0, 1, 1], [], []>} : vector<8x32xf32>, vector<32x128xf32>, vector<8x128xf32> -> vector<8x128xf32>
    %90 = arith.addf %88, %89 : vector<8x128xf32>
    %91 = vector.extract_strided_slice %90 {offsets = [0, 0], sizes = [8, 96], strides = [1, 1]} : vector<8x128xf32> to vector<8x96xf32>
    %92 = arith.negf %91 : vector<8x96xf32>
    %93 = math.exp %92 : vector<8x96xf32>
    %cst_46 = arith.constant 1.000000e+00 : f32
    %94 = vector.broadcast %cst_46 : f32 to vector<8x96xf32>
    %95 = arith.addf %94, %93 : vector<8x96xf32>
    %96 = arith.divf %94, %95 : vector<8x96xf32>
    %97 = vector.extract_strided_slice %90 {offsets = [0, 96], sizes = [8, 32], strides = [1, 1]} : vector<8x128xf32> to vector<8x32xf32>
    %98 = math.tanh %97 : vector<8x32xf32>
    %99 = vector.extract_strided_slice %96 {offsets = [0, 0], sizes = [8, 32], strides = [1, 1]} : vector<8x96xf32> to vector<8x32xf32>
    %100 = vector.extract_strided_slice %96 {offsets = [0, 32], sizes = [8, 32], strides = [1, 1]} : vector<8x96xf32> to vector<8x32xf32>
    %101 = vector.extract_strided_slice %96 {offsets = [0, 64], sizes = [8, 32], strides = [1, 1]} : vector<8x96xf32> to vector<8x32xf32>
    %102 = arith.mulf %100, %46 : vector<8x32xf32>
    %103 = arith.mulf %99, %98 : vector<8x32xf32>
    %104 = arith.addf %102, %103 : vector<8x32xf32>
    %105 = math.tanh %104 : vector<8x32xf32>
    %106 = arith.mulf %101, %105 : vector<8x32xf32>
    %107 = arith.select %81, %106, %45 : vector<8x32xf32>
    %108 = arith.select %81, %104, %46 : vector<8x32xf32>
    %c1_i32_47 = arith.constant 1 : i32
    %109 = arith.subi %c1_i32_37, %c1_i32_47 : i32
    %c0_i32_48 = arith.constant 0 : i32
    %110 = arith.cmpi sge, %109, %c0_i32_48 : i32
    %c8_i32_49 = arith.constant 8 : i32
    %111 = arith.cmpi slt, %109, %c8_i32_49 : i32
    %112 = arith.andi %110, %111 : i1
    %c0_i32_50 = arith.constant 0 : i32
    %c7_i32_51 = arith.constant 7 : i32
    %113 = arith.maxsi %c0_i32_50, %109 : i32
    %114 = arith.minsi %c7_i32_51, %113 : i32
    %cst_52 = arith.constant dense<0.000000e+00> : vector<8x128xf32>
    %115 = tpu.matmul %45, %4, %cst_52 {dimension_numbers = #tpu.dot_dimension_numbers<[1], [0], [0], [1], [0, 0, 1, 1], [], []>} : vector<8x32xf32>, vector<32x128xf32>, vector<8x128xf32> -> vector<8x128xf32>
    %116 = vector.broadcast %6 : vector<1x128xf32> to vector<8x128xf32>
    %117 = arith.addf %115, %116 : vector<8x128xf32>
    %cst_53 = arith.constant dense<0.000000e+00> : vector<8x128xf32>
    %118 = tpu.matmul %74, %5, %cst_53 {dimension_numbers = #tpu.dot_dimension_numbers<[1], [0], [0], [1], [0, 0, 1, 1], [], []>} : vector<8x32xf32>, vector<32x128xf32>, vector<8x128xf32> -> vector<8x128xf32>
    %119 = arith.addf %117, %118 : vector<8x128xf32>
    %120 = vector.extract_strided_slice %119 {offsets = [0, 0], sizes = [8, 96], strides = [1, 1]} : vector<8x128xf32> to vector<8x96xf32>
    %121 = arith.negf %120 : vector<8x96xf32>
    %122 = math.exp %121 : vector<8x96xf32>
    %cst_54 = arith.constant 1.000000e+00 : f32
    %123 = vector.broadcast %cst_54 : f32 to vector<8x96xf32>
    %124 = arith.addf %123, %122 : vector<8x96xf32>
    %125 = arith.divf %123, %124 : vector<8x96xf32>
    %126 = vector.extract_strided_slice %119 {offsets = [0, 96], sizes = [8, 32], strides = [1, 1]} : vector<8x128xf32> to vector<8x32xf32>
    %127 = math.tanh %126 : vector<8x32xf32>
    %128 = vector.extract_strided_slice %125 {offsets = [0, 0], sizes = [8, 32], strides = [1, 1]} : vector<8x96xf32> to vector<8x32xf32>
    %129 = vector.extract_strided_slice %125 {offsets = [0, 32], sizes = [8, 32], strides = [1, 1]} : vector<8x96xf32> to vector<8x32xf32>
    %130 = vector.extract_strided_slice %125 {offsets = [0, 64], sizes = [8, 32], strides = [1, 1]} : vector<8x96xf32> to vector<8x32xf32>
    %131 = arith.mulf %129, %75 : vector<8x32xf32>
    %132 = arith.mulf %128, %127 : vector<8x32xf32>
    %133 = arith.addf %131, %132 : vector<8x32xf32>
    %134 = math.tanh %133 : vector<8x32xf32>
    %135 = arith.mulf %130, %134 : vector<8x32xf32>
    %136 = arith.select %112, %135, %74 : vector<8x32xf32>
    %137 = arith.select %112, %133, %75 : vector<8x32xf32>
    %138 = arith.extui %112 : i1 to i32
    %c0_i32_55 = arith.constant 0 : i32
    %139 = arith.cmpi ne, %138, %c0_i32_55 : i32
    scf.if %139 {
      %c8_i32_195 = arith.constant 8 : i32
      %586 = arith.muli %114, %c8_i32_195 : i32
      %587 = tpu.assume_multiple %586, 8 : i32
      %588 = arith.index_cast %587 : i32 to index
      %c0_196 = arith.constant 0 : index
      %589 = vector.load %arg10[%588, %c0_196] : memref<64x32xf32, #tpu.memory_space<vmem>>, vector<8x32xf32>
      tpu.vector_store %arg10[%588, %c0_196], %135 {strides = array<i32>} : memref<64x32xf32, #tpu.memory_space<vmem>>, vector<8x32xf32>,
    } else {
    }
    %c2_i32 = arith.constant 2 : i32
    %c0_i32_56 = arith.constant 0 : i32
    %140 = arith.subi %c2_i32, %c0_i32_56 : i32
    %c0_i32_57 = arith.constant 0 : i32
    %141 = arith.cmpi sge, %140, %c0_i32_57 : i32
    %c8_i32_58 = arith.constant 8 : i32
    %142 = arith.cmpi slt, %140, %c8_i32_58 : i32
    %143 = arith.andi %141, %142 : i1
    %c0_i32_59 = arith.constant 0 : i32
    %c7_i32_60 = arith.constant 7 : i32
    %144 = arith.maxsi %c0_i32_59, %140 : i32
    %145 = arith.minsi %c7_i32_60, %144 : i32
    %c8_i32_61 = arith.constant 8 : i32
    %146 = arith.muli %145, %c8_i32_61 : i32
    %147 = tpu.assume_multiple %146, 8 : i32
    %148 = arith.index_cast %147 : i32 to index
    %c0_62 = arith.constant 0 : index
    %149 = vector.load %arg13[%148, %c0_62] : memref<64x128xf32, #tpu.memory_space<vmem>>, vector<8x128xf32>
    %150 = arith.addf %149, %13 : vector<8x128xf32>
    %cst_63 = arith.constant dense<0.000000e+00> : vector<8x128xf32>
    %151 = tpu.matmul %107, %2, %cst_63 {dimension_numbers = #tpu.dot_dimension_numbers<[1], [0], [0], [1], [0, 0, 1, 1], [], []>} : vector<8x32xf32>, vector<32x128xf32>, vector<8x128xf32> -> vector<8x128xf32>
    %152 = arith.addf %150, %151 : vector<8x128xf32>
    %153 = vector.extract_strided_slice %152 {offsets = [0, 0], sizes = [8, 96], strides = [1, 1]} : vector<8x128xf32> to vector<8x96xf32>
    %154 = arith.negf %153 : vector<8x96xf32>
    %155 = math.exp %154 : vector<8x96xf32>
    %cst_64 = arith.constant 1.000000e+00 : f32
    %156 = vector.broadcast %cst_64 : f32 to vector<8x96xf32>
    %157 = arith.addf %156, %155 : vector<8x96xf32>
    %158 = arith.divf %156, %157 : vector<8x96xf32>
    %159 = vector.extract_strided_slice %152 {offsets = [0, 96], sizes = [8, 32], strides = [1, 1]} : vector<8x128xf32> to vector<8x32xf32>
    %160 = math.tanh %159 : vector<8x32xf32>
    %161 = vector.extract_strided_slice %158 {offsets = [0, 0], sizes = [8, 32], strides = [1, 1]} : vector<8x96xf32> to vector<8x32xf32>
    %162 = vector.extract_strided_slice %158 {offsets = [0, 32], sizes = [8, 32], strides = [1, 1]} : vector<8x96xf32> to vector<8x32xf32>
    %163 = vector.extract_strided_slice %158 {offsets = [0, 64], sizes = [8, 32], strides = [1, 1]} : vector<8x96xf32> to vector<8x32xf32>
    %164 = arith.mulf %162, %108 : vector<8x32xf32>
    %165 = arith.mulf %161, %160 : vector<8x32xf32>
    %166 = arith.addf %164, %165 : vector<8x32xf32>
    %167 = math.tanh %166 : vector<8x32xf32>
    %168 = arith.mulf %163, %167 : vector<8x32xf32>
    %169 = arith.select %143, %168, %107 : vector<8x32xf32>
    %170 = arith.select %143, %166, %108 : vector<8x32xf32>
    %c1_i32_65 = arith.constant 1 : i32
    %171 = arith.subi %c2_i32, %c1_i32_65 : i32
    %c0_i32_66 = arith.constant 0 : i32
    %172 = arith.cmpi sge, %171, %c0_i32_66 : i32
    %c8_i32_67 = arith.constant 8 : i32
    %173 = arith.cmpi slt, %171, %c8_i32_67 : i32
    %174 = arith.andi %172, %173 : i1
    %c0_i32_68 = arith.constant 0 : i32
    %c7_i32_69 = arith.constant 7 : i32
    %175 = arith.maxsi %c0_i32_68, %171 : i32
    %176 = arith.minsi %c7_i32_69, %175 : i32
    %cst_70 = arith.constant dense<0.000000e+00> : vector<8x128xf32>
    %177 = tpu.matmul %107, %4, %cst_70 {dimension_numbers = #tpu.dot_dimension_numbers<[1], [0], [0], [1], [0, 0, 1, 1], [], []>} : vector<8x32xf32>, vector<32x128xf32>, vector<8x128xf32> -> vector<8x128xf32>
    %178 = vector.broadcast %6 : vector<1x128xf32> to vector<8x128xf32>
    %179 = arith.addf %177, %178 : vector<8x128xf32>
    %cst_71 = arith.constant dense<0.000000e+00> : vector<8x128xf32>
    %180 = tpu.matmul %136, %5, %cst_71 {dimension_numbers = #tpu.dot_dimension_numbers<[1], [0], [0], [1], [0, 0, 1, 1], [], []>} : vector<8x32xf32>, vector<32x128xf32>, vector<8x128xf32> -> vector<8x128xf32>
    %181 = arith.addf %179, %180 : vector<8x128xf32>
    %182 = vector.extract_strided_slice %181 {offsets = [0, 0], sizes = [8, 96], strides = [1, 1]} : vector<8x128xf32> to vector<8x96xf32>
    %183 = arith.negf %182 : vector<8x96xf32>
    %184 = math.exp %183 : vector<8x96xf32>
    %cst_72 = arith.constant 1.000000e+00 : f32
    %185 = vector.broadcast %cst_72 : f32 to vector<8x96xf32>
    %186 = arith.addf %185, %184 : vector<8x96xf32>
    %187 = arith.divf %185, %186 : vector<8x96xf32>
    %188 = vector.extract_strided_slice %181 {offsets = [0, 96], sizes = [8, 32], strides = [1, 1]} : vector<8x128xf32> to vector<8x32xf32>
    %189 = math.tanh %188 : vector<8x32xf32>
    %190 = vector.extract_strided_slice %187 {offsets = [0, 0], sizes = [8, 32], strides = [1, 1]} : vector<8x96xf32> to vector<8x32xf32>
    %191 = vector.extract_strided_slice %187 {offsets = [0, 32], sizes = [8, 32], strides = [1, 1]} : vector<8x96xf32> to vector<8x32xf32>
    %192 = vector.extract_strided_slice %187 {offsets = [0, 64], sizes = [8, 32], strides = [1, 1]} : vector<8x96xf32> to vector<8x32xf32>
    %193 = arith.mulf %191, %137 : vector<8x32xf32>
    %194 = arith.mulf %190, %189 : vector<8x32xf32>
    %195 = arith.addf %193, %194 : vector<8x32xf32>
    %196 = math.tanh %195 : vector<8x32xf32>
    %197 = arith.mulf %192, %196 : vector<8x32xf32>
    %198 = arith.select %174, %197, %136 : vector<8x32xf32>
    %199 = arith.select %174, %195, %137 : vector<8x32xf32>
    %200 = arith.extui %174 : i1 to i32
    %c0_i32_73 = arith.constant 0 : i32
    %201 = arith.cmpi ne, %200, %c0_i32_73 : i32
    scf.if %201 {
      %c8_i32_195 = arith.constant 8 : i32
      %586 = arith.muli %176, %c8_i32_195 : i32
      %587 = tpu.assume_multiple %586, 8 : i32
      %588 = arith.index_cast %587 : i32 to index
      %c0_196 = arith.constant 0 : index
      %589 = vector.load %arg10[%588, %c0_196] : memref<64x32xf32, #tpu.memory_space<vmem>>, vector<8x32xf32>
      tpu.vector_store %arg10[%588, %c0_196], %197 {strides = array<i32>} : memref<64x32xf32, #tpu.memory_space<vmem>>, vector<8x32xf32>,
    } else {
    }
    %c3_i32 = arith.constant 3 : i32
    %c0_i32_74 = arith.constant 0 : i32
    %202 = arith.subi %c3_i32, %c0_i32_74 : i32
    %c0_i32_75 = arith.constant 0 : i32
    %203 = arith.cmpi sge, %202, %c0_i32_75 : i32
    %c8_i32_76 = arith.constant 8 : i32
    %204 = arith.cmpi slt, %202, %c8_i32_76 : i32
    %205 = arith.andi %203, %204 : i1
    %c0_i32_77 = arith.constant 0 : i32
    %c7_i32_78 = arith.constant 7 : i32
    %206 = arith.maxsi %c0_i32_77, %202 : i32
    %207 = arith.minsi %c7_i32_78, %206 : i32
    %c8_i32_79 = arith.constant 8 : i32
    %208 = arith.muli %207, %c8_i32_79 : i32
    %209 = tpu.assume_multiple %208, 8 : i32
    %210 = arith.index_cast %209 : i32 to index
    %c0_80 = arith.constant 0 : index
    %211 = vector.load %arg13[%210, %c0_80] : memref<64x128xf32, #tpu.memory_space<vmem>>, vector<8x128xf32>
    %212 = arith.addf %211, %13 : vector<8x128xf32>
    %cst_81 = arith.constant dense<0.000000e+00> : vector<8x128xf32>
    %213 = tpu.matmul %169, %2, %cst_81 {dimension_numbers = #tpu.dot_dimension_numbers<[1], [0], [0], [1], [0, 0, 1, 1], [], []>} : vector<8x32xf32>, vector<32x128xf32>, vector<8x128xf32> -> vector<8x128xf32>
    %214 = arith.addf %212, %213 : vector<8x128xf32>
    %215 = vector.extract_strided_slice %214 {offsets = [0, 0], sizes = [8, 96], strides = [1, 1]} : vector<8x128xf32> to vector<8x96xf32>
    %216 = arith.negf %215 : vector<8x96xf32>
    %217 = math.exp %216 : vector<8x96xf32>
    %cst_82 = arith.constant 1.000000e+00 : f32
    %218 = vector.broadcast %cst_82 : f32 to vector<8x96xf32>
    %219 = arith.addf %218, %217 : vector<8x96xf32>
    %220 = arith.divf %218, %219 : vector<8x96xf32>
    %221 = vector.extract_strided_slice %214 {offsets = [0, 96], sizes = [8, 32], strides = [1, 1]} : vector<8x128xf32> to vector<8x32xf32>
    %222 = math.tanh %221 : vector<8x32xf32>
    %223 = vector.extract_strided_slice %220 {offsets = [0, 0], sizes = [8, 32], strides = [1, 1]} : vector<8x96xf32> to vector<8x32xf32>
    %224 = vector.extract_strided_slice %220 {offsets = [0, 32], sizes = [8, 32], strides = [1, 1]} : vector<8x96xf32> to vector<8x32xf32>
    %225 = vector.extract_strided_slice %220 {offsets = [0, 64], sizes = [8, 32], strides = [1, 1]} : vector<8x96xf32> to vector<8x32xf32>
    %226 = arith.mulf %224, %170 : vector<8x32xf32>
    %227 = arith.mulf %223, %222 : vector<8x32xf32>
    %228 = arith.addf %226, %227 : vector<8x32xf32>
    %229 = math.tanh %228 : vector<8x32xf32>
    %230 = arith.mulf %225, %229 : vector<8x32xf32>
    %231 = arith.select %205, %230, %169 : vector<8x32xf32>
    %232 = arith.select %205, %228, %170 : vector<8x32xf32>
    %c1_i32_83 = arith.constant 1 : i32
    %233 = arith.subi %c3_i32, %c1_i32_83 : i32
    %c0_i32_84 = arith.constant 0 : i32
    %234 = arith.cmpi sge, %233, %c0_i32_84 : i32
    %c8_i32_85 = arith.constant 8 : i32
    %235 = arith.cmpi slt, %233, %c8_i32_85 : i32
    %236 = arith.andi %234, %235 : i1
    %c0_i32_86 = arith.constant 0 : i32
    %c7_i32_87 = arith.constant 7 : i32
    %237 = arith.maxsi %c0_i32_86, %233 : i32
    %238 = arith.minsi %c7_i32_87, %237 : i32
    %cst_88 = arith.constant dense<0.000000e+00> : vector<8x128xf32>
    %239 = tpu.matmul %169, %4, %cst_88 {dimension_numbers = #tpu.dot_dimension_numbers<[1], [0], [0], [1], [0, 0, 1, 1], [], []>} : vector<8x32xf32>, vector<32x128xf32>, vector<8x128xf32> -> vector<8x128xf32>
    %240 = vector.broadcast %6 : vector<1x128xf32> to vector<8x128xf32>
    %241 = arith.addf %239, %240 : vector<8x128xf32>
    %cst_89 = arith.constant dense<0.000000e+00> : vector<8x128xf32>
    %242 = tpu.matmul %198, %5, %cst_89 {dimension_numbers = #tpu.dot_dimension_numbers<[1], [0], [0], [1], [0, 0, 1, 1], [], []>} : vector<8x32xf32>, vector<32x128xf32>, vector<8x128xf32> -> vector<8x128xf32>
    %243 = arith.addf %241, %242 : vector<8x128xf32>
    %244 = vector.extract_strided_slice %243 {offsets = [0, 0], sizes = [8, 96], strides = [1, 1]} : vector<8x128xf32> to vector<8x96xf32>
    %245 = arith.negf %244 : vector<8x96xf32>
    %246 = math.exp %245 : vector<8x96xf32>
    %cst_90 = arith.constant 1.000000e+00 : f32
    %247 = vector.broadcast %cst_90 : f32 to vector<8x96xf32>
    %248 = arith.addf %247, %246 : vector<8x96xf32>
    %249 = arith.divf %247, %248 : vector<8x96xf32>
    %250 = vector.extract_strided_slice %243 {offsets = [0, 96], sizes = [8, 32], strides = [1, 1]} : vector<8x128xf32> to vector<8x32xf32>
    %251 = math.tanh %250 : vector<8x32xf32>
    %252 = vector.extract_strided_slice %249 {offsets = [0, 0], sizes = [8, 32], strides = [1, 1]} : vector<8x96xf32> to vector<8x32xf32>
    %253 = vector.extract_strided_slice %249 {offsets = [0, 32], sizes = [8, 32], strides = [1, 1]} : vector<8x96xf32> to vector<8x32xf32>
    %254 = vector.extract_strided_slice %249 {offsets = [0, 64], sizes = [8, 32], strides = [1, 1]} : vector<8x96xf32> to vector<8x32xf32>
    %255 = arith.mulf %253, %199 : vector<8x32xf32>
    %256 = arith.mulf %252, %251 : vector<8x32xf32>
    %257 = arith.addf %255, %256 : vector<8x32xf32>
    %258 = math.tanh %257 : vector<8x32xf32>
    %259 = arith.mulf %254, %258 : vector<8x32xf32>
    %260 = arith.select %236, %259, %198 : vector<8x32xf32>
    %261 = arith.select %236, %257, %199 : vector<8x32xf32>
    %262 = arith.extui %236 : i1 to i32
    %c0_i32_91 = arith.constant 0 : i32
    %263 = arith.cmpi ne, %262, %c0_i32_91 : i32
    scf.if %263 {
      %c8_i32_195 = arith.constant 8 : i32
      %586 = arith.muli %238, %c8_i32_195 : i32
      %587 = tpu.assume_multiple %586, 8 : i32
      %588 = arith.index_cast %587 : i32 to index
      %c0_196 = arith.constant 0 : index
      %589 = vector.load %arg10[%588, %c0_196] : memref<64x32xf32, #tpu.memory_space<vmem>>, vector<8x32xf32>
      tpu.vector_store %arg10[%588, %c0_196], %259 {strides = array<i32>} : memref<64x32xf32, #tpu.memory_space<vmem>>, vector<8x32xf32>,
    } else {
    }
    %c4_i32 = arith.constant 4 : i32
    %c0_i32_92 = arith.constant 0 : i32
    %264 = arith.subi %c4_i32, %c0_i32_92 : i32
    %c0_i32_93 = arith.constant 0 : i32
    %265 = arith.cmpi sge, %264, %c0_i32_93 : i32
    %c8_i32_94 = arith.constant 8 : i32
    %266 = arith.cmpi slt, %264, %c8_i32_94 : i32
    %267 = arith.andi %265, %266 : i1
    %c0_i32_95 = arith.constant 0 : i32
    %c7_i32_96 = arith.constant 7 : i32
    %268 = arith.maxsi %c0_i32_95, %264 : i32
    %269 = arith.minsi %c7_i32_96, %268 : i32
    %c8_i32_97 = arith.constant 8 : i32
    %270 = arith.muli %269, %c8_i32_97 : i32
    %271 = tpu.assume_multiple %270, 8 : i32
    %272 = arith.index_cast %271 : i32 to index
    %c0_98 = arith.constant 0 : index
    %273 = vector.load %arg13[%272, %c0_98] : memref<64x128xf32, #tpu.memory_space<vmem>>, vector<8x128xf32>
    %274 = arith.addf %273, %13 : vector<8x128xf32>
    %cst_99 = arith.constant dense<0.000000e+00> : vector<8x128xf32>
    %275 = tpu.matmul %231, %2, %cst_99 {dimension_numbers = #tpu.dot_dimension_numbers<[1], [0], [0], [1], [0, 0, 1, 1], [], []>} : vector<8x32xf32>, vector<32x128xf32>, vector<8x128xf32> -> vector<8x128xf32>
    %276 = arith.addf %274, %275 : vector<8x128xf32>
    %277 = vector.extract_strided_slice %276 {offsets = [0, 0], sizes = [8, 96], strides = [1, 1]} : vector<8x128xf32> to vector<8x96xf32>
    %278 = arith.negf %277 : vector<8x96xf32>
    %279 = math.exp %278 : vector<8x96xf32>
    %cst_100 = arith.constant 1.000000e+00 : f32
    %280 = vector.broadcast %cst_100 : f32 to vector<8x96xf32>
    %281 = arith.addf %280, %279 : vector<8x96xf32>
    %282 = arith.divf %280, %281 : vector<8x96xf32>
    %283 = vector.extract_strided_slice %276 {offsets = [0, 96], sizes = [8, 32], strides = [1, 1]} : vector<8x128xf32> to vector<8x32xf32>
    %284 = math.tanh %283 : vector<8x32xf32>
    %285 = vector.extract_strided_slice %282 {offsets = [0, 0], sizes = [8, 32], strides = [1, 1]} : vector<8x96xf32> to vector<8x32xf32>
    %286 = vector.extract_strided_slice %282 {offsets = [0, 32], sizes = [8, 32], strides = [1, 1]} : vector<8x96xf32> to vector<8x32xf32>
    %287 = vector.extract_strided_slice %282 {offsets = [0, 64], sizes = [8, 32], strides = [1, 1]} : vector<8x96xf32> to vector<8x32xf32>
    %288 = arith.mulf %286, %232 : vector<8x32xf32>
    %289 = arith.mulf %285, %284 : vector<8x32xf32>
    %290 = arith.addf %288, %289 : vector<8x32xf32>
    %291 = math.tanh %290 : vector<8x32xf32>
    %292 = arith.mulf %287, %291 : vector<8x32xf32>
    %293 = arith.select %267, %292, %231 : vector<8x32xf32>
    %294 = arith.select %267, %290, %232 : vector<8x32xf32>
    %c1_i32_101 = arith.constant 1 : i32
    %295 = arith.subi %c4_i32, %c1_i32_101 : i32
    %c0_i32_102 = arith.constant 0 : i32
    %296 = arith.cmpi sge, %295, %c0_i32_102 : i32
    %c8_i32_103 = arith.constant 8 : i32
    %297 = arith.cmpi slt, %295, %c8_i32_103 : i32
    %298 = arith.andi %296, %297 : i1
    %c0_i32_104 = arith.constant 0 : i32
    %c7_i32_105 = arith.constant 7 : i32
    %299 = arith.maxsi %c0_i32_104, %295 : i32
    %300 = arith.minsi %c7_i32_105, %299 : i32
    %cst_106 = arith.constant dense<0.000000e+00> : vector<8x128xf32>
    %301 = tpu.matmul %231, %4, %cst_106 {dimension_numbers = #tpu.dot_dimension_numbers<[1], [0], [0], [1], [0, 0, 1, 1], [], []>} : vector<8x32xf32>, vector<32x128xf32>, vector<8x128xf32> -> vector<8x128xf32>
    %302 = vector.broadcast %6 : vector<1x128xf32> to vector<8x128xf32>
    %303 = arith.addf %301, %302 : vector<8x128xf32>
    %cst_107 = arith.constant dense<0.000000e+00> : vector<8x128xf32>
    %304 = tpu.matmul %260, %5, %cst_107 {dimension_numbers = #tpu.dot_dimension_numbers<[1], [0], [0], [1], [0, 0, 1, 1], [], []>} : vector<8x32xf32>, vector<32x128xf32>, vector<8x128xf32> -> vector<8x128xf32>
    %305 = arith.addf %303, %304 : vector<8x128xf32>
    %306 = vector.extract_strided_slice %305 {offsets = [0, 0], sizes = [8, 96], strides = [1, 1]} : vector<8x128xf32> to vector<8x96xf32>
    %307 = arith.negf %306 : vector<8x96xf32>
    %308 = math.exp %307 : vector<8x96xf32>
    %cst_108 = arith.constant 1.000000e+00 : f32
    %309 = vector.broadcast %cst_108 : f32 to vector<8x96xf32>
    %310 = arith.addf %309, %308 : vector<8x96xf32>
    %311 = arith.divf %309, %310 : vector<8x96xf32>
    %312 = vector.extract_strided_slice %305 {offsets = [0, 96], sizes = [8, 32], strides = [1, 1]} : vector<8x128xf32> to vector<8x32xf32>
    %313 = math.tanh %312 : vector<8x32xf32>
    %314 = vector.extract_strided_slice %311 {offsets = [0, 0], sizes = [8, 32], strides = [1, 1]} : vector<8x96xf32> to vector<8x32xf32>
    %315 = vector.extract_strided_slice %311 {offsets = [0, 32], sizes = [8, 32], strides = [1, 1]} : vector<8x96xf32> to vector<8x32xf32>
    %316 = vector.extract_strided_slice %311 {offsets = [0, 64], sizes = [8, 32], strides = [1, 1]} : vector<8x96xf32> to vector<8x32xf32>
    %317 = arith.mulf %315, %261 : vector<8x32xf32>
    %318 = arith.mulf %314, %313 : vector<8x32xf32>
    %319 = arith.addf %317, %318 : vector<8x32xf32>
    %320 = math.tanh %319 : vector<8x32xf32>
    %321 = arith.mulf %316, %320 : vector<8x32xf32>
    %322 = arith.select %298, %321, %260 : vector<8x32xf32>
    %323 = arith.select %298, %319, %261 : vector<8x32xf32>
    %324 = arith.extui %298 : i1 to i32
    %c0_i32_109 = arith.constant 0 : i32
    %325 = arith.cmpi ne, %324, %c0_i32_109 : i32
    scf.if %325 {
      %c8_i32_195 = arith.constant 8 : i32
      %586 = arith.muli %300, %c8_i32_195 : i32
      %587 = tpu.assume_multiple %586, 8 : i32
      %588 = arith.index_cast %587 : i32 to index
      %c0_196 = arith.constant 0 : index
      %589 = vector.load %arg10[%588, %c0_196] : memref<64x32xf32, #tpu.memory_space<vmem>>, vector<8x32xf32>
      tpu.vector_store %arg10[%588, %c0_196], %321 {strides = array<i32>} : memref<64x32xf32, #tpu.memory_space<vmem>>, vector<8x32xf32>,
    } else {
    }
    %c5_i32 = arith.constant 5 : i32
    %c0_i32_110 = arith.constant 0 : i32
    %326 = arith.subi %c5_i32, %c0_i32_110 : i32
    %c0_i32_111 = arith.constant 0 : i32
    %327 = arith.cmpi sge, %326, %c0_i32_111 : i32
    %c8_i32_112 = arith.constant 8 : i32
    %328 = arith.cmpi slt, %326, %c8_i32_112 : i32
    %329 = arith.andi %327, %328 : i1
    %c0_i32_113 = arith.constant 0 : i32
    %c7_i32_114 = arith.constant 7 : i32
    %330 = arith.maxsi %c0_i32_113, %326 : i32
    %331 = arith.minsi %c7_i32_114, %330 : i32
    %c8_i32_115 = arith.constant 8 : i32
    %332 = arith.muli %331, %c8_i32_115 : i32
    %333 = tpu.assume_multiple %332, 8 : i32
    %334 = arith.index_cast %333 : i32 to index
    %c0_116 = arith.constant 0 : index
    %335 = vector.load %arg13[%334, %c0_116] : memref<64x128xf32, #tpu.memory_space<vmem>>, vector<8x128xf32>
    %336 = arith.addf %335, %13 : vector<8x128xf32>
    %cst_117 = arith.constant dense<0.000000e+00> : vector<8x128xf32>
    %337 = tpu.matmul %293, %2, %cst_117 {dimension_numbers = #tpu.dot_dimension_numbers<[1], [0], [0], [1], [0, 0, 1, 1], [], []>} : vector<8x32xf32>, vector<32x128xf32>, vector<8x128xf32> -> vector<8x128xf32>
    %338 = arith.addf %336, %337 : vector<8x128xf32>
    %339 = vector.extract_strided_slice %338 {offsets = [0, 0], sizes = [8, 96], strides = [1, 1]} : vector<8x128xf32> to vector<8x96xf32>
    %340 = arith.negf %339 : vector<8x96xf32>
    %341 = math.exp %340 : vector<8x96xf32>
    %cst_118 = arith.constant 1.000000e+00 : f32
    %342 = vector.broadcast %cst_118 : f32 to vector<8x96xf32>
    %343 = arith.addf %342, %341 : vector<8x96xf32>
    %344 = arith.divf %342, %343 : vector<8x96xf32>
    %345 = vector.extract_strided_slice %338 {offsets = [0, 96], sizes = [8, 32], strides = [1, 1]} : vector<8x128xf32> to vector<8x32xf32>
    %346 = math.tanh %345 : vector<8x32xf32>
    %347 = vector.extract_strided_slice %344 {offsets = [0, 0], sizes = [8, 32], strides = [1, 1]} : vector<8x96xf32> to vector<8x32xf32>
    %348 = vector.extract_strided_slice %344 {offsets = [0, 32], sizes = [8, 32], strides = [1, 1]} : vector<8x96xf32> to vector<8x32xf32>
    %349 = vector.extract_strided_slice %344 {offsets = [0, 64], sizes = [8, 32], strides = [1, 1]} : vector<8x96xf32> to vector<8x32xf32>
    %350 = arith.mulf %348, %294 : vector<8x32xf32>
    %351 = arith.mulf %347, %346 : vector<8x32xf32>
    %352 = arith.addf %350, %351 : vector<8x32xf32>
    %353 = math.tanh %352 : vector<8x32xf32>
    %354 = arith.mulf %349, %353 : vector<8x32xf32>
    %355 = arith.select %329, %354, %293 : vector<8x32xf32>
    %356 = arith.select %329, %352, %294 : vector<8x32xf32>
    %c1_i32_119 = arith.constant 1 : i32
    %357 = arith.subi %c5_i32, %c1_i32_119 : i32
    %c0_i32_120 = arith.constant 0 : i32
    %358 = arith.cmpi sge, %357, %c0_i32_120 : i32
    %c8_i32_121 = arith.constant 8 : i32
    %359 = arith.cmpi slt, %357, %c8_i32_121 : i32
    %360 = arith.andi %358, %359 : i1
    %c0_i32_122 = arith.constant 0 : i32
    %c7_i32_123 = arith.constant 7 : i32
    %361 = arith.maxsi %c0_i32_122, %357 : i32
    %362 = arith.minsi %c7_i32_123, %361 : i32
    %cst_124 = arith.constant dense<0.000000e+00> : vector<8x128xf32>
    %363 = tpu.matmul %293, %4, %cst_124 {dimension_numbers = #tpu.dot_dimension_numbers<[1], [0], [0], [1], [0, 0, 1, 1], [], []>} : vector<8x32xf32>, vector<32x128xf32>, vector<8x128xf32> -> vector<8x128xf32>
    %364 = vector.broadcast %6 : vector<1x128xf32> to vector<8x128xf32>
    %365 = arith.addf %363, %364 : vector<8x128xf32>
    %cst_125 = arith.constant dense<0.000000e+00> : vector<8x128xf32>
    %366 = tpu.matmul %322, %5, %cst_125 {dimension_numbers = #tpu.dot_dimension_numbers<[1], [0], [0], [1], [0, 0, 1, 1], [], []>} : vector<8x32xf32>, vector<32x128xf32>, vector<8x128xf32> -> vector<8x128xf32>
    %367 = arith.addf %365, %366 : vector<8x128xf32>
    %368 = vector.extract_strided_slice %367 {offsets = [0, 0], sizes = [8, 96], strides = [1, 1]} : vector<8x128xf32> to vector<8x96xf32>
    %369 = arith.negf %368 : vector<8x96xf32>
    %370 = math.exp %369 : vector<8x96xf32>
    %cst_126 = arith.constant 1.000000e+00 : f32
    %371 = vector.broadcast %cst_126 : f32 to vector<8x96xf32>
    %372 = arith.addf %371, %370 : vector<8x96xf32>
    %373 = arith.divf %371, %372 : vector<8x96xf32>
    %374 = vector.extract_strided_slice %367 {offsets = [0, 96], sizes = [8, 32], strides = [1, 1]} : vector<8x128xf32> to vector<8x32xf32>
    %375 = math.tanh %374 : vector<8x32xf32>
    %376 = vector.extract_strided_slice %373 {offsets = [0, 0], sizes = [8, 32], strides = [1, 1]} : vector<8x96xf32> to vector<8x32xf32>
    %377 = vector.extract_strided_slice %373 {offsets = [0, 32], sizes = [8, 32], strides = [1, 1]} : vector<8x96xf32> to vector<8x32xf32>
    %378 = vector.extract_strided_slice %373 {offsets = [0, 64], sizes = [8, 32], strides = [1, 1]} : vector<8x96xf32> to vector<8x32xf32>
    %379 = arith.mulf %377, %323 : vector<8x32xf32>
    %380 = arith.mulf %376, %375 : vector<8x32xf32>
    %381 = arith.addf %379, %380 : vector<8x32xf32>
    %382 = math.tanh %381 : vector<8x32xf32>
    %383 = arith.mulf %378, %382 : vector<8x32xf32>
    %384 = arith.select %360, %383, %322 : vector<8x32xf32>
    %385 = arith.select %360, %381, %323 : vector<8x32xf32>
    %386 = arith.extui %360 : i1 to i32
    %c0_i32_127 = arith.constant 0 : i32
    %387 = arith.cmpi ne, %386, %c0_i32_127 : i32
    scf.if %387 {
      %c8_i32_195 = arith.constant 8 : i32
      %586 = arith.muli %362, %c8_i32_195 : i32
      %587 = tpu.assume_multiple %586, 8 : i32
      %588 = arith.index_cast %587 : i32 to index
      %c0_196 = arith.constant 0 : index
      %589 = vector.load %arg10[%588, %c0_196] : memref<64x32xf32, #tpu.memory_space<vmem>>, vector<8x32xf32>
      tpu.vector_store %arg10[%588, %c0_196], %383 {strides = array<i32>} : memref<64x32xf32, #tpu.memory_space<vmem>>, vector<8x32xf32>,
    } else {
    }
    %c6_i32 = arith.constant 6 : i32
    %c0_i32_128 = arith.constant 0 : i32
    %388 = arith.subi %c6_i32, %c0_i32_128 : i32
    %c0_i32_129 = arith.constant 0 : i32
    %389 = arith.cmpi sge, %388, %c0_i32_129 : i32
    %c8_i32_130 = arith.constant 8 : i32
    %390 = arith.cmpi slt, %388, %c8_i32_130 : i32
    %391 = arith.andi %389, %390 : i1
    %c0_i32_131 = arith.constant 0 : i32
    %c7_i32_132 = arith.constant 7 : i32
    %392 = arith.maxsi %c0_i32_131, %388 : i32
    %393 = arith.minsi %c7_i32_132, %392 : i32
    %c8_i32_133 = arith.constant 8 : i32
    %394 = arith.muli %393, %c8_i32_133 : i32
    %395 = tpu.assume_multiple %394, 8 : i32
    %396 = arith.index_cast %395 : i32 to index
    %c0_134 = arith.constant 0 : index
    %397 = vector.load %arg13[%396, %c0_134] : memref<64x128xf32, #tpu.memory_space<vmem>>, vector<8x128xf32>
    %398 = arith.addf %397, %13 : vector<8x128xf32>
    %cst_135 = arith.constant dense<0.000000e+00> : vector<8x128xf32>
    %399 = tpu.matmul %355, %2, %cst_135 {dimension_numbers = #tpu.dot_dimension_numbers<[1], [0], [0], [1], [0, 0, 1, 1], [], []>} : vector<8x32xf32>, vector<32x128xf32>, vector<8x128xf32> -> vector<8x128xf32>
    %400 = arith.addf %398, %399 : vector<8x128xf32>
    %401 = vector.extract_strided_slice %400 {offsets = [0, 0], sizes = [8, 96], strides = [1, 1]} : vector<8x128xf32> to vector<8x96xf32>
    %402 = arith.negf %401 : vector<8x96xf32>
    %403 = math.exp %402 : vector<8x96xf32>
    %cst_136 = arith.constant 1.000000e+00 : f32
    %404 = vector.broadcast %cst_136 : f32 to vector<8x96xf32>
    %405 = arith.addf %404, %403 : vector<8x96xf32>
    %406 = arith.divf %404, %405 : vector<8x96xf32>
    %407 = vector.extract_strided_slice %400 {offsets = [0, 96], sizes = [8, 32], strides = [1, 1]} : vector<8x128xf32> to vector<8x32xf32>
    %408 = math.tanh %407 : vector<8x32xf32>
    %409 = vector.extract_strided_slice %406 {offsets = [0, 0], sizes = [8, 32], strides = [1, 1]} : vector<8x96xf32> to vector<8x32xf32>
    %410 = vector.extract_strided_slice %406 {offsets = [0, 32], sizes = [8, 32], strides = [1, 1]} : vector<8x96xf32> to vector<8x32xf32>
    %411 = vector.extract_strided_slice %406 {offsets = [0, 64], sizes = [8, 32], strides = [1, 1]} : vector<8x96xf32> to vector<8x32xf32>
    %412 = arith.mulf %410, %356 : vector<8x32xf32>
    %413 = arith.mulf %409, %408 : vector<8x32xf32>
    %414 = arith.addf %412, %413 : vector<8x32xf32>
    %415 = math.tanh %414 : vector<8x32xf32>
    %416 = arith.mulf %411, %415 : vector<8x32xf32>
    %417 = arith.select %391, %416, %355 : vector<8x32xf32>
    %418 = arith.select %391, %414, %356 : vector<8x32xf32>
    %c1_i32_137 = arith.constant 1 : i32
    %419 = arith.subi %c6_i32, %c1_i32_137 : i32
    %c0_i32_138 = arith.constant 0 : i32
    %420 = arith.cmpi sge, %419, %c0_i32_138 : i32
    %c8_i32_139 = arith.constant 8 : i32
    %421 = arith.cmpi slt, %419, %c8_i32_139 : i32
    %422 = arith.andi %420, %421 : i1
    %c0_i32_140 = arith.constant 0 : i32
    %c7_i32_141 = arith.constant 7 : i32
    %423 = arith.maxsi %c0_i32_140, %419 : i32
    %424 = arith.minsi %c7_i32_141, %423 : i32
    %cst_142 = arith.constant dense<0.000000e+00> : vector<8x128xf32>
    %425 = tpu.matmul %355, %4, %cst_142 {dimension_numbers = #tpu.dot_dimension_numbers<[1], [0], [0], [1], [0, 0, 1, 1], [], []>} : vector<8x32xf32>, vector<32x128xf32>, vector<8x128xf32> -> vector<8x128xf32>
    %426 = vector.broadcast %6 : vector<1x128xf32> to vector<8x128xf32>
    %427 = arith.addf %425, %426 : vector<8x128xf32>
    %cst_143 = arith.constant dense<0.000000e+00> : vector<8x128xf32>
    %428 = tpu.matmul %384, %5, %cst_143 {dimension_numbers = #tpu.dot_dimension_numbers<[1], [0], [0], [1], [0, 0, 1, 1], [], []>} : vector<8x32xf32>, vector<32x128xf32>, vector<8x128xf32> -> vector<8x128xf32>
    %429 = arith.addf %427, %428 : vector<8x128xf32>
    %430 = vector.extract_strided_slice %429 {offsets = [0, 0], sizes = [8, 96], strides = [1, 1]} : vector<8x128xf32> to vector<8x96xf32>
    %431 = arith.negf %430 : vector<8x96xf32>
    %432 = math.exp %431 : vector<8x96xf32>
    %cst_144 = arith.constant 1.000000e+00 : f32
    %433 = vector.broadcast %cst_144 : f32 to vector<8x96xf32>
    %434 = arith.addf %433, %432 : vector<8x96xf32>
    %435 = arith.divf %433, %434 : vector<8x96xf32>
    %436 = vector.extract_strided_slice %429 {offsets = [0, 96], sizes = [8, 32], strides = [1, 1]} : vector<8x128xf32> to vector<8x32xf32>
    %437 = math.tanh %436 : vector<8x32xf32>
    %438 = vector.extract_strided_slice %435 {offsets = [0, 0], sizes = [8, 32], strides = [1, 1]} : vector<8x96xf32> to vector<8x32xf32>
    %439 = vector.extract_strided_slice %435 {offsets = [0, 32], sizes = [8, 32], strides = [1, 1]} : vector<8x96xf32> to vector<8x32xf32>
    %440 = vector.extract_strided_slice %435 {offsets = [0, 64], sizes = [8, 32], strides = [1, 1]} : vector<8x96xf32> to vector<8x32xf32>
    %441 = arith.mulf %439, %385 : vector<8x32xf32>
    %442 = arith.mulf %438, %437 : vector<8x32xf32>
    %443 = arith.addf %441, %442 : vector<8x32xf32>
    %444 = math.tanh %443 : vector<8x32xf32>
    %445 = arith.mulf %440, %444 : vector<8x32xf32>
    %446 = arith.select %422, %445, %384 : vector<8x32xf32>
    %447 = arith.select %422, %443, %385 : vector<8x32xf32>
    %448 = arith.extui %422 : i1 to i32
    %c0_i32_145 = arith.constant 0 : i32
    %449 = arith.cmpi ne, %448, %c0_i32_145 : i32
    scf.if %449 {
      %c8_i32_195 = arith.constant 8 : i32
      %586 = arith.muli %424, %c8_i32_195 : i32
      %587 = tpu.assume_multiple %586, 8 : i32
      %588 = arith.index_cast %587 : i32 to index
      %c0_196 = arith.constant 0 : index
      %589 = vector.load %arg10[%588, %c0_196] : memref<64x32xf32, #tpu.memory_space<vmem>>, vector<8x32xf32>
      tpu.vector_store %arg10[%588, %c0_196], %445 {strides = array<i32>} : memref<64x32xf32, #tpu.memory_space<vmem>>, vector<8x32xf32>,
    } else {
    }
    %c7_i32_146 = arith.constant 7 : i32
    %c0_i32_147 = arith.constant 0 : i32
    %450 = arith.subi %c7_i32_146, %c0_i32_147 : i32
    %c0_i32_148 = arith.constant 0 : i32
    %451 = arith.cmpi sge, %450, %c0_i32_148 : i32
    %c8_i32_149 = arith.constant 8 : i32
    %452 = arith.cmpi slt, %450, %c8_i32_149 : i32
    %453 = arith.andi %451, %452 : i1
    %c0_i32_150 = arith.constant 0 : i32
    %c7_i32_151 = arith.constant 7 : i32
    %454 = arith.maxsi %c0_i32_150, %450 : i32
    %455 = arith.minsi %c7_i32_151, %454 : i32
    %c8_i32_152 = arith.constant 8 : i32
    %456 = arith.muli %455, %c8_i32_152 : i32
    %457 = tpu.assume_multiple %456, 8 : i32
    %458 = arith.index_cast %457 : i32 to index
    %c0_153 = arith.constant 0 : index
    %459 = vector.load %arg13[%458, %c0_153] : memref<64x128xf32, #tpu.memory_space<vmem>>, vector<8x128xf32>
    %460 = arith.addf %459, %13 : vector<8x128xf32>
    %cst_154 = arith.constant dense<0.000000e+00> : vector<8x128xf32>
    %461 = tpu.matmul %417, %2, %cst_154 {dimension_numbers = #tpu.dot_dimension_numbers<[1], [0], [0], [1], [0, 0, 1, 1], [], []>} : vector<8x32xf32>, vector<32x128xf32>, vector<8x128xf32> -> vector<8x128xf32>
    %462 = arith.addf %460, %461 : vector<8x128xf32>
    %463 = vector.extract_strided_slice %462 {offsets = [0, 0], sizes = [8, 96], strides = [1, 1]} : vector<8x128xf32> to vector<8x96xf32>
    %464 = arith.negf %463 : vector<8x96xf32>
    %465 = math.exp %464 : vector<8x96xf32>
    %cst_155 = arith.constant 1.000000e+00 : f32
    %466 = vector.broadcast %cst_155 : f32 to vector<8x96xf32>
    %467 = arith.addf %466, %465 : vector<8x96xf32>
    %468 = arith.divf %466, %467 : vector<8x96xf32>
    %469 = vector.extract_strided_slice %462 {offsets = [0, 96], sizes = [8, 32], strides = [1, 1]} : vector<8x128xf32> to vector<8x32xf32>
    %470 = math.tanh %469 : vector<8x32xf32>
    %471 = vector.extract_strided_slice %468 {offsets = [0, 0], sizes = [8, 32], strides = [1, 1]} : vector<8x96xf32> to vector<8x32xf32>
    %472 = vector.extract_strided_slice %468 {offsets = [0, 32], sizes = [8, 32], strides = [1, 1]} : vector<8x96xf32> to vector<8x32xf32>
    %473 = vector.extract_strided_slice %468 {offsets = [0, 64], sizes = [8, 32], strides = [1, 1]} : vector<8x96xf32> to vector<8x32xf32>
    %474 = arith.mulf %472, %418 : vector<8x32xf32>
    %475 = arith.mulf %471, %470 : vector<8x32xf32>
    %476 = arith.addf %474, %475 : vector<8x32xf32>
    %477 = math.tanh %476 : vector<8x32xf32>
    %478 = arith.mulf %473, %477 : vector<8x32xf32>
    %479 = arith.select %453, %478, %417 : vector<8x32xf32>
    %480 = arith.select %453, %476, %418 : vector<8x32xf32>
    %c1_i32_156 = arith.constant 1 : i32
    %481 = arith.subi %c7_i32_146, %c1_i32_156 : i32
    %c0_i32_157 = arith.constant 0 : i32
    %482 = arith.cmpi sge, %481, %c0_i32_157 : i32
    %c8_i32_158 = arith.constant 8 : i32
    %483 = arith.cmpi slt, %481, %c8_i32_158 : i32
    %484 = arith.andi %482, %483 : i1
    %c0_i32_159 = arith.constant 0 : i32
    %c7_i32_160 = arith.constant 7 : i32
    %485 = arith.maxsi %c0_i32_159, %481 : i32
    %486 = arith.minsi %c7_i32_160, %485 : i32
    %cst_161 = arith.constant dense<0.000000e+00> : vector<8x128xf32>
    %487 = tpu.matmul %417, %4, %cst_161 {dimension_numbers = #tpu.dot_dimension_numbers<[1], [0], [0], [1], [0, 0, 1, 1], [], []>} : vector<8x32xf32>, vector<32x128xf32>, vector<8x128xf32> -> vector<8x128xf32>
    %488 = vector.broadcast %6 : vector<1x128xf32> to vector<8x128xf32>
    %489 = arith.addf %487, %488 : vector<8x128xf32>
    %cst_162 = arith.constant dense<0.000000e+00> : vector<8x128xf32>
    %490 = tpu.matmul %446, %5, %cst_162 {dimension_numbers = #tpu.dot_dimension_numbers<[1], [0], [0], [1], [0, 0, 1, 1], [], []>} : vector<8x32xf32>, vector<32x128xf32>, vector<8x128xf32> -> vector<8x128xf32>
    %491 = arith.addf %489, %490 : vector<8x128xf32>
    %492 = vector.extract_strided_slice %491 {offsets = [0, 0], sizes = [8, 96], strides = [1, 1]} : vector<8x128xf32> to vector<8x96xf32>
    %493 = arith.negf %492 : vector<8x96xf32>
    %494 = math.exp %493 : vector<8x96xf32>
    %cst_163 = arith.constant 1.000000e+00 : f32
    %495 = vector.broadcast %cst_163 : f32 to vector<8x96xf32>
    %496 = arith.addf %495, %494 : vector<8x96xf32>
    %497 = arith.divf %495, %496 : vector<8x96xf32>
    %498 = vector.extract_strided_slice %491 {offsets = [0, 96], sizes = [8, 32], strides = [1, 1]} : vector<8x128xf32> to vector<8x32xf32>
    %499 = math.tanh %498 : vector<8x32xf32>
    %500 = vector.extract_strided_slice %497 {offsets = [0, 0], sizes = [8, 32], strides = [1, 1]} : vector<8x96xf32> to vector<8x32xf32>
    %501 = vector.extract_strided_slice %497 {offsets = [0, 32], sizes = [8, 32], strides = [1, 1]} : vector<8x96xf32> to vector<8x32xf32>
    %502 = vector.extract_strided_slice %497 {offsets = [0, 64], sizes = [8, 32], strides = [1, 1]} : vector<8x96xf32> to vector<8x32xf32>
    %503 = arith.mulf %501, %447 : vector<8x32xf32>
    %504 = arith.mulf %500, %499 : vector<8x32xf32>
    %505 = arith.addf %503, %504 : vector<8x32xf32>
    %506 = math.tanh %505 : vector<8x32xf32>
    %507 = arith.mulf %502, %506 : vector<8x32xf32>
    %508 = arith.select %484, %507, %446 : vector<8x32xf32>
    %509 = arith.select %484, %505, %447 : vector<8x32xf32>
    %510 = arith.extui %484 : i1 to i32
    %c0_i32_164 = arith.constant 0 : i32
    %511 = arith.cmpi ne, %510, %c0_i32_164 : i32
    scf.if %511 {
      %c8_i32_195 = arith.constant 8 : i32
      %586 = arith.muli %486, %c8_i32_195 : i32
      %587 = tpu.assume_multiple %586, 8 : i32
      %588 = arith.index_cast %587 : i32 to index
      %c0_196 = arith.constant 0 : index
      %589 = vector.load %arg10[%588, %c0_196] : memref<64x32xf32, #tpu.memory_space<vmem>>, vector<8x32xf32>
      tpu.vector_store %arg10[%588, %c0_196], %507 {strides = array<i32>} : memref<64x32xf32, #tpu.memory_space<vmem>>, vector<8x32xf32>,
    } else {
    }
    %c8_i32_165 = arith.constant 8 : i32
    %c0_i32_166 = arith.constant 0 : i32
    %512 = arith.subi %c8_i32_165, %c0_i32_166 : i32
    %c0_i32_167 = arith.constant 0 : i32
    %513 = arith.cmpi sge, %512, %c0_i32_167 : i32
    %c8_i32_168 = arith.constant 8 : i32
    %514 = arith.cmpi slt, %512, %c8_i32_168 : i32
    %515 = arith.andi %513, %514 : i1
    %c0_i32_169 = arith.constant 0 : i32
    %c7_i32_170 = arith.constant 7 : i32
    %516 = arith.maxsi %c0_i32_169, %512 : i32
    %517 = arith.minsi %c7_i32_170, %516 : i32
    %c8_i32_171 = arith.constant 8 : i32
    %518 = arith.muli %517, %c8_i32_171 : i32
    %519 = tpu.assume_multiple %518, 8 : i32
    %520 = arith.index_cast %519 : i32 to index
    %c0_172 = arith.constant 0 : index
    %521 = vector.load %arg13[%520, %c0_172] : memref<64x128xf32, #tpu.memory_space<vmem>>, vector<8x128xf32>
    %522 = arith.addf %521, %13 : vector<8x128xf32>
    %cst_173 = arith.constant dense<0.000000e+00> : vector<8x128xf32>
    %523 = tpu.matmul %479, %2, %cst_173 {dimension_numbers = #tpu.dot_dimension_numbers<[1], [0], [0], [1], [0, 0, 1, 1], [], []>} : vector<8x32xf32>, vector<32x128xf32>, vector<8x128xf32> -> vector<8x128xf32>
    %524 = arith.addf %522, %523 : vector<8x128xf32>
    %525 = vector.extract_strided_slice %524 {offsets = [0, 0], sizes = [8, 96], strides = [1, 1]} : vector<8x128xf32> to vector<8x96xf32>
    %526 = arith.negf %525 : vector<8x96xf32>
    %527 = math.exp %526 : vector<8x96xf32>
    %cst_174 = arith.constant 1.000000e+00 : f32
    %528 = vector.broadcast %cst_174 : f32 to vector<8x96xf32>
    %529 = arith.addf %528, %527 : vector<8x96xf32>
    %530 = arith.divf %528, %529 : vector<8x96xf32>
    %531 = vector.extract_strided_slice %524 {offsets = [0, 96], sizes = [8, 32], strides = [1, 1]} : vector<8x128xf32> to vector<8x32xf32>
    %532 = math.tanh %531 : vector<8x32xf32>
    %533 = vector.extract_strided_slice %530 {offsets = [0, 0], sizes = [8, 32], strides = [1, 1]} : vector<8x96xf32> to vector<8x32xf32>
    %534 = vector.extract_strided_slice %530 {offsets = [0, 32], sizes = [8, 32], strides = [1, 1]} : vector<8x96xf32> to vector<8x32xf32>
    %535 = vector.extract_strided_slice %530 {offsets = [0, 64], sizes = [8, 32], strides = [1, 1]} : vector<8x96xf32> to vector<8x32xf32>
    %536 = arith.mulf %534, %480 : vector<8x32xf32>
    %537 = arith.mulf %533, %532 : vector<8x32xf32>
    %538 = arith.addf %536, %537 : vector<8x32xf32>
    %539 = math.tanh %538 : vector<8x32xf32>
    %540 = arith.mulf %535, %539 : vector<8x32xf32>
    %541 = arith.select %515, %540, %479 : vector<8x32xf32>
    %542 = arith.select %515, %538, %480 : vector<8x32xf32>
    %c1_i32_175 = arith.constant 1 : i32
    %543 = arith.subi %c8_i32_165, %c1_i32_175 : i32
    %c0_i32_176 = arith.constant 0 : i32
    %544 = arith.cmpi sge, %543, %c0_i32_176 : i32
    %c8_i32_177 = arith.constant 8 : i32
    %545 = arith.cmpi slt, %543, %c8_i32_177 : i32
    %546 = arith.andi %544, %545 : i1
    %c0_i32_178 = arith.constant 0 : i32
    %c7_i32_179 = arith.constant 7 : i32
    %547 = arith.maxsi %c0_i32_178, %543 : i32
    %548 = arith.minsi %c7_i32_179, %547 : i32
    %cst_180 = arith.constant dense<0.000000e+00> : vector<8x128xf32>
    %549 = tpu.matmul %479, %4, %cst_180 {dimension_numbers = #tpu.dot_dimension_numbers<[1], [0], [0], [1], [0, 0, 1, 1], [], []>} : vector<8x32xf32>, vector<32x128xf32>, vector<8x128xf32> -> vector<8x128xf32>
    %550 = vector.broadcast %6 : vector<1x128xf32> to vector<8x128xf32>
    %551 = arith.addf %549, %550 : vector<8x128xf32>
    %cst_181 = arith.constant dense<0.000000e+00> : vector<8x128xf32>
    %552 = tpu.matmul %508, %5, %cst_181 {dimension_numbers = #tpu.dot_dimension_numbers<[1], [0], [0], [1], [0, 0, 1, 1], [], []>} : vector<8x32xf32>, vector<32x128xf32>, vector<8x128xf32> -> vector<8x128xf32>
    %553 = arith.addf %551, %552 : vector<8x128xf32>
    %554 = vector.extract_strided_slice %553 {offsets = [0, 0], sizes = [8, 96], strides = [1, 1]} : vector<8x128xf32> to vector<8x96xf32>
    %555 = arith.negf %554 : vector<8x96xf32>
    %556 = math.exp %555 : vector<8x96xf32>
    %cst_182 = arith.constant 1.000000e+00 : f32
    %557 = vector.broadcast %cst_182 : f32 to vector<8x96xf32>
    %558 = arith.addf %557, %556 : vector<8x96xf32>
    %559 = arith.divf %557, %558 : vector<8x96xf32>
    %560 = vector.extract_strided_slice %553 {offsets = [0, 96], sizes = [8, 32], strides = [1, 1]} : vector<8x128xf32> to vector<8x32xf32>
    %561 = math.tanh %560 : vector<8x32xf32>
    %562 = vector.extract_strided_slice %559 {offsets = [0, 0], sizes = [8, 32], strides = [1, 1]} : vector<8x96xf32> to vector<8x32xf32>
    %563 = vector.extract_strided_slice %559 {offsets = [0, 32], sizes = [8, 32], strides = [1, 1]} : vector<8x96xf32> to vector<8x32xf32>
    %564 = vector.extract_strided_slice %559 {offsets = [0, 64], sizes = [8, 32], strides = [1, 1]} : vector<8x96xf32> to vector<8x32xf32>
    %565 = arith.mulf %563, %509 : vector<8x32xf32>
    %566 = arith.mulf %562, %561 : vector<8x32xf32>
    %567 = arith.addf %565, %566 : vector<8x32xf32>
    %568 = math.tanh %567 : vector<8x32xf32>
    %569 = arith.mulf %564, %568 : vector<8x32xf32>
    %570 = arith.select %546, %569, %508 : vector<8x32xf32>
    %571 = arith.select %546, %567, %509 : vector<8x32xf32>
    %572 = arith.extui %546 : i1 to i32
    %c0_i32_183 = arith.constant 0 : i32
    %573 = arith.cmpi ne, %572, %c0_i32_183 : i32
    scf.if %573 {
      %c8_i32_195 = arith.constant 8 : i32
      %586 = arith.muli %548, %c8_i32_195 : i32
      %587 = tpu.assume_multiple %586, 8 : i32
      %588 = arith.index_cast %587 : i32 to index
      %c0_196 = arith.constant 0 : index
      %589 = vector.load %arg10[%588, %c0_196] : memref<64x32xf32, #tpu.memory_space<vmem>>, vector<8x32xf32>
      tpu.vector_store %arg10[%588, %c0_196], %569 {strides = array<i32>} : memref<64x32xf32, #tpu.memory_space<vmem>>, vector<8x32xf32>,
    } else {
    }
    %c9_i32 = arith.constant 9 : i32
    %c0_184 = arith.constant 0 : index
    %c0_185 = arith.constant 0 : index
    %c0_186 = arith.constant 0 : index
    %574 = vector.load %arg11[%c0_184, %c0_185, %c0_186] : memref<2x8x32xf32, #tpu.memory_space<vmem>>, vector<1x8x32xf32>
    %575 = vector.shape_cast %574 : vector<1x8x32xf32> to vector<8x32xf32>
    %576 = vector.shape_cast %541 : vector<8x32xf32> to vector<1x8x32xf32>
    tpu.vector_store %arg11[%c0_184, %c0_185, %c0_186], %576 {strides = array<i32>} : memref<2x8x32xf32, #tpu.memory_space<vmem>>, vector<1x8x32xf32>,
    %c0_187 = arith.constant 0 : index
    %c0_188 = arith.constant 0 : index
    %c0_189 = arith.constant 0 : index
    %577 = vector.load %arg12[%c0_187, %c0_188, %c0_189] : memref<2x8x32xf32, #tpu.memory_space<vmem>>, vector<1x8x32xf32>
    %578 = vector.shape_cast %577 : vector<1x8x32xf32> to vector<8x32xf32>
    %579 = vector.shape_cast %542 : vector<8x32xf32> to vector<1x8x32xf32>
    tpu.vector_store %arg12[%c0_187, %c0_188, %c0_189], %579 {strides = array<i32>} : memref<2x8x32xf32, #tpu.memory_space<vmem>>, vector<1x8x32xf32>,
    %c1 = arith.constant 1 : index
    %c0_190 = arith.constant 0 : index
    %c0_191 = arith.constant 0 : index
    %580 = vector.load %arg11[%c1, %c0_190, %c0_191] : memref<2x8x32xf32, #tpu.memory_space<vmem>>, vector<1x8x32xf32>
    %581 = vector.shape_cast %580 : vector<1x8x32xf32> to vector<8x32xf32>
    %582 = vector.shape_cast %570 : vector<8x32xf32> to vector<1x8x32xf32>
    tpu.vector_store %arg11[%c1, %c0_190, %c0_191], %582 {strides = array<i32>} : memref<2x8x32xf32, #tpu.memory_space<vmem>>, vector<1x8x32xf32>,
    %c1_192 = arith.constant 1 : index
    %c0_193 = arith.constant 0 : index
    %c0_194 = arith.constant 0 : index
    %583 = vector.load %arg12[%c1_192, %c0_193, %c0_194] : memref<2x8x32xf32, #tpu.memory_space<vmem>>, vector<1x8x32xf32>
    %584 = vector.shape_cast %583 : vector<1x8x32xf32> to vector<8x32xf32>
    %585 = vector.shape_cast %571 : vector<8x32xf32> to vector<1x8x32xf32>
    tpu.vector_store %arg12[%c1_192, %c0_193, %c0_194], %585 {strides = array<i32>} : memref<2x8x32xf32, #tpu.memory_space<vmem>>, vector<1x8x32xf32>,
    return
  }
  func.func @transform_0(%arg0: i32) -> (i32, i32) {
    %c0_i32 = arith.constant 0 : i32
    %c0_i32_0 = arith.constant 0 : i32
    %c0_i32_1 = arith.constant 0 : i32
    return %c0_i32, %c0_i32_0 : i32, i32
  }
  func.func @transform_1(%arg0: i32) -> (i32, i32) {
    %c0_i32 = arith.constant 0 : i32
    %c0_i32_0 = arith.constant 0 : i32
    %c0_i32_1 = arith.constant 0 : i32
    return %c0_i32, %c0_i32_0 : i32, i32
  }
  func.func @transform_2(%arg0: i32) -> (i32, i32) {
    %c0_i32 = arith.constant 0 : i32
    %c0_i32_0 = arith.constant 0 : i32
    %c0_i32_1 = arith.constant 0 : i32
    return %c0_i32, %c0_i32_0 : i32, i32
  }
  func.func @transform_3(%arg0: i32) -> (i32, i32) {
    %c0_i32 = arith.constant 0 : i32
    %c0_i32_0 = arith.constant 0 : i32
    %c0_i32_1 = arith.constant 0 : i32
    return %c0_i32, %c0_i32_0 : i32, i32
  }
  func.func @transform_4(%arg0: i32) -> (i32, i32) {
    %c0_i32 = arith.constant 0 : i32
    %c0_i32_0 = arith.constant 0 : i32
    %c0_i32_1 = arith.constant 0 : i32
    return %c0_i32, %c0_i32_0 : i32, i32
  }
  func.func @transform_5(%arg0: i32) -> (i32, i32) {
    %c0_i32 = arith.constant 0 : i32
    %c0_i32_0 = arith.constant 0 : i32
    %c0_i32_1 = arith.constant 0 : i32
    return %c0_i32, %c0_i32_0 : i32, i32
  }
  func.func @transform_6(%arg0: i32) -> (i32, i32) {
    %c0_i32 = arith.constant 0 : i32
    %c0_i32_0 = arith.constant 0 : i32
    %c0_i32_1 = arith.constant 0 : i32
    return %c0_i32, %c0_i32_0 : i32, i32
  }
  func.func @transform_7(%arg0: i32) -> (i32, i32) {
    %c0_i32 = arith.constant 0 : i32
    %c0_i32_0 = arith.constant 0 : i32
    %c0_i32_1 = arith.constant 0 : i32
    return %c0_i32, %c0_i32_0 : i32, i32
  }
  func.func @transform_8(%arg0: i32) -> (i32, i32) {
    %c0_i32 = arith.constant 0 : i32
    %c0_i32_0 = arith.constant 0 : i32
    %c0_i32_1 = arith.constant 0 : i32
    return %c0_i32, %c0_i32_0 : i32, i32
  }
  func.func @transform_9(%arg0: i32) -> (i32, i32) {
    %c0_i32 = arith.constant 0 : i32
    %c0_i32_0 = arith.constant 0 : i32
    %c0_i32_1 = arith.constant 0 : i32
    return %c0_i32, %c0_i32_0 : i32, i32
  }
  func.func @transform_10(%arg0: i32) -> (i32, i32, i32) {
    %c0_i32 = arith.constant 0 : i32
    %c0_i32_0 = arith.constant 0 : i32
    %c0_i32_1 = arith.constant 0 : i32
    %c0_i32_2 = arith.constant 0 : i32
    return %c0_i32, %c0_i32_0, %c0_i32_1 : i32, i32, i32
  }
  func.func @transform_11(%arg0: i32) -> (i32, i32, i32) {
    %c0_i32 = arith.constant 0 : i32
    %c0_i32_0 = arith.constant 0 : i32
    %c0_i32_1 = arith.constant 0 : i32
    %c0_i32_2 = arith.constant 0 : i32
    return %c0_i32, %c0_i32_0, %c0_i32_1 : i32, i32, i32
  }
}

</mosaic_0001>

<bundles_post_ra>
// kernel: basic_decoder_forward.3
= control target key start
LH: loop header
LB: loop body
LE: loop exit
PB: predicated region body
PF: predicated region fallthrough
CT: control target
= control target key end

     0   :  { %vm34_vm0 = vcmask 261120   ;;  %s480_s1 = inlined_call_operand.vmem [shape: f32[32,128], index: 1, kind: input, shape index: {}]   ;;  %s481_s0 = inlined_call_operand.vmem [shape: f32[64,32], index: 0, kind: input, shape index: {}]   ;;  %s482_s2 = inlined_call_operand.vmem [shape: f32[64,128], index: 2, kind: input, shape index: {}]   ;;  %s483_s3 = inlined_call_operand.vmem [shape: f32[64,128], index: 3, kind: output, shape index: {}]  }
   0x1   :  { %v25_v0 = vld [vmem:[%s480_s1 + $0x18] sm:$0xff]  ;;  %v24_v1 = vld [vmem:[%s480_s1 + $0x10] sm:$0xff]  ;;  %v23_v2 = vld [vmem:[%s480_s1 + $0x8] sm:$0xff] }
   0x2   :  { %276 = vmatprep.subr.mxu0 %v25_v0  ;;  %296 = vmatprep.subr.mxu1 %v25_v0  ;;  %v22_v3 = vld [vmem:[%s480_s1] sm:$0xff]  ;;  %v15_v6 = vld [vmem:[%s481_s0 + $0x8] sm:$0xff]  ;;  %v16_v8 = vld [vmem:[%s481_s0 + $0x10] sm:$0xff] }
   0x3   :  { %277 = vmatpush3.msra.mxu0 %v25_v0  ;;  %300 = vmatpush3.msra.mxu1 %v25_v0  ;;  %v14_v4 = vld [vmem:[%s481_s0] sm:$0xff]  ;;  %v19_v7 = vld [vmem:[%s481_s0 + $0x28] sm:$0xff]  ;;  %v20_v9 = vld [vmem:[%s481_s0 + $0x30] sm:$0xff] }
   0x4   :  { %278 = vmatprep.subr.mxu0 %v24_v1  ;;  %297 = vmatprep.subr.mxu1 %v24_v1  ;;  %v18_v5 = vld [vmem:[%s481_s0 + $0x20] sm:$0xff]  ;;  %v17_v10 = vld [vmem:[%s481_s0 + $0x18] sm:$0xff]  ;;  %v27_v12 = vld [vmem:[%s482_s2 + $0x8] sm:$0xff] }
   0x5   :  { %279 = vmatpush3.msra.mxu0 %v24_v1  ;;  %301 = vmatpush3.msra.mxu1 %v24_v1  ;;  %v21_v11 = vld [vmem:[%s481_s0 + $0x38] sm:$0xff]  ;;  %v31_v13 = vld [vmem:[%s482_s2 + $0x28] sm:$0xff]  ;;  %v26_v19 = vld [vmem:[%s482_s2] sm:$0xff] }
   0x6   :  { %280 = vmatprep.subr.mxu0 %v23_v2  ;;  %298 = vmatprep.subr.mxu1 %v23_v2  ;;  %v29_v20 = vld [vmem:[%s482_s2 + $0x18] sm:$0xff]  ;;  %v28_v23 = vld [vmem:[%s482_s2 + $0x10] sm:$0xff]  ;;  %v30_v27 = vld [vmem:[%s482_s2 + $0x20] sm:$0xff] }
   0x7   :  { %281 = vmatpush3.msra.mxu0 %v23_v2  ;;  %302 = vmatpush3.msra.mxu1 %v23_v2  ;;  %v33_v30 = vld [vmem:[%s482_s2 + $0x38] sm:$0xff]  ;;  %v32_v32 = vld [vmem:[%s482_s2 + $0x30] sm:$0xff] }
   0x8   :  { %282 = vmatprep.subr.mxu0 %v22_v3  ;;  %299 = vmatprep.subr.mxu1 %v22_v3 }
   0x9   :  { %283 = vmatpush3.msra.mxu0 %v22_v3  ;;  %303 = vmatpush3.msra.mxu1 %v22_v3 }
   0xa   :  { %284 = vmatprep.mubr.msk.f32.mxu0 %vm34_vm0, %v14_v4  ;;  %290 = vmatprep.mubr.msk.f32.mxu1 %vm34_vm0, %v18_v5 }
   0xb   :  { %285 = vmatmul.mubr.msk.f32.vlgmr.msra.gmra.mxu0 %vm34_vm0, %v15_v6  ;;  %291 = vmatmul.mubr.msk.f32.vlgmr.msra.gmra.mxu1 %vm34_vm0, %v19_v7 }
   0xc   :  { %287 = vmatprep.mubr.msk.f32.mxu0 %vm34_vm0, %v16_v8  ;;  %293 = vmatprep.mubr.msk.f32.mxu1 %vm34_vm0, %v20_v9 }
   0xf   :  { %288 = vmatmul.mubr.msk.f32.gmra.mxu0 %vm34_vm0, %v17_v10  ;;  %294 = vmatmul.mubr.msk.f32.gmra.mxu1 %vm34_vm0, %v21_v11 }
  0xcb   :  { %v286_v14 = vpop.f32.mrf.mxu0  ;;  %v292_v15 = vpop.f32.mrf.mxu1 }
  0xcc   :  { %v131_v16 = vadd.f32 %v286_v14, %v27_v12  ;;  %v151_v17 = vadd.f32 %v292_v15, %v31_v13 }
  0xcd   :  { %v125_v18 = vpop.f32.mrf.mxu0  ;;  %v145_v21 = vpop.f32.mrf.mxu1 }
  0xce   :  { %174 = vmax.xlane.f32.xlu1 %v151_v17  ;;  %166 = vmax.xlane.f32.xlu0 %v131_v16  ;;  %v126_v25 = vadd.f32 %v125_v18, %v26_v19  ;;  %v146_v33 = vadd.f32 %v145_v21, %v30_v27 }
  0xcf   :  { %v289_v22 = vpop.f32.mrf.mxu0  ;;  %v295_v24 = vpop.f32.mrf.mxu1 }
  0xd0   :  { %v141_v26 = vadd.f32 %v289_v22, %v29_v20  ;;  %v161_v34 = vadd.f32 %v295_v24, %v33_v30 }
  0xd1   :  { %v135_v28 = vpop.f32.mrf.mxu0  ;;  %v155_v31 = vpop.f32.mrf.mxu1 }
  0xd2   :  { %170 = vmax.xlane.f32.xlu1 %v141_v26  ;;  %164 = vmax.xlane.f32.xlu0 %v126_v25  ;;  %v136_v29 = vadd.f32 %v135_v28, %v28_v23  ;;  %v156_v35 = vadd.f32 %v155_v31, %v32_v32 }
  0xd6   :  { %168 = vmax.xlane.f32.xlu1 %v136_v29  ;;  %172 = vmax.xlane.f32.xlu0 %v146_v33 }
  0xda   :  { %178 = vmax.xlane.f32.xlu1 %v161_v34  ;;  %176 = vmax.xlane.f32.xlu0 %v156_v35 }
 0x157   :  { %v175_v36 = vpop.xlane.xlu1 %174  ;;  %v167_v37 = vpop.xlane.xlu0 %166 }
 0x158   :  { %v424_v38 = vsub.f32 %v151_v17, %v175_v36  ;;  %v426_v39 = vsub.f32 %v131_v16, %v167_v37 }
 0x15a   :  { %v190_v40 = vmul.f32 1.442695, %v426_v39  ;;  %v198_v43 = vmul.f32 1.442695, %v424_v38 }
 0x15b   :  { %v171_v41 = vpop.xlane.xlu1 %170  ;;  %v165_v42 = vpop.xlane.xlu0 %164 }
 0x15c   :  { %v430_v44 = vsub.f32 %v141_v26, %v171_v41  ;;  %v432_v45 = vsub.f32 %v126_v25, %v165_v42  ;;  %304 = vpow2.f32 %v190_v40 }
 0x15d   :  { %306 = vpow2.f32 %v198_v43 }
 0x15e   :  { %v188_v46 = vmul.f32 1.442695, %v432_v45  ;;  %v194_v49 = vmul.f32 1.442695, %v430_v44 }
 0x15f   :  { %v169_v47 = vpop.xlane.xlu1 %168  ;;  %v173_v48 = vpop.xlane.xlu0 %172 }
 0x160   :  { %v436_v50 = vsub.f32 %v146_v33, %v173_v48  ;;  %308 = vpow2.f32 %v188_v46  ;;  %v438_v51 = vsub.f32 %v136_v29, %v169_v47 }
 0x161   :  { %310 = vpow2.f32 %v194_v49 }
 0x162   :  { %v196_v52 = vmul.f32 1.442695, %v436_v50  ;;  %v192_v56 = vmul.f32 1.442695, %v438_v51 }
 0x163   :  { %v179_v53 = vpop.xlane.xlu1 %178  ;;  %v177_v54 = vpop.xlane.xlu0 %176 }
 0x164   :  { %v441_v55 = vsub.f32 %v161_v34, %v179_v53  ;;  %312 = vpow2.f32 %v196_v52  ;;  %v444_v57 = vsub.f32 %v156_v35, %v177_v54 }
 0x166   :  { %v202_v58 = vmul.f32 1.442695, %v441_v55  ;;  %v200_v59 = vmul.f32 1.442695, %v444_v57 }
 0x168   :  { %314 = vpow2.f32 %v202_v58 }
 0x169   :  { %316 = vpow2.f32 %v192_v56  ;;  %v305_v60 = vpop.eup %304 }
 0x16a   :  { %206 = vadd.xlane.f32.xlu1 %v305_v60  ;;  %v307_v61 = vpop.eup %306  ;;  %318 = vpow2.f32 %v200_v59 }
 0x16d   :  { %v309_v62 = vpop.eup %308 }
 0x16e   :  { %214 = vadd.xlane.f32.xlu1 %v307_v61  ;;  %204 = vadd.xlane.f32.xlu0 %v309_v62  ;;  %v311_v63 = vpop.eup %310 }
 0x171   :  { %v313_v0 = vpop.eup %312 }
 0x172   :  { %210 = vadd.xlane.f32.xlu1 %v311_v63  ;;  %212 = vadd.xlane.f32.xlu0 %v313_v0 }
 0x175   :  { %v315_v1 = vpop.eup %314 }
 0x176   :  { %v317_v2 = vpop.eup %316  ;;  %218 = vadd.xlane.f32.xlu1 %v315_v1 }
 0x177   :  { %208 = vadd.xlane.f32.xlu0 %v317_v2  ;;  %v319_v3 = vpop.eup %318 }
 0x17b   :  { %216 = vadd.xlane.f32.xlu0 %v319_v3 }
 0x1f3   :  { %v207_v4 = vpop.xlane.xlu1 %206 }
 0x1f4   :  { %320 = vlog2.f32 %v207_v4 }
 0x1f7   :  { %v215_v5 = vpop.xlane.xlu1 %214  ;;  %v205_v6 = vpop.xlane.xlu0 %204 }
 0x1f8   :  { %322 = vlog2.f32 %v215_v5 }
 0x1f9   :  { %324 = vlog2.f32 %v205_v6 }
 0x1fb   :  { %v211_v7 = vpop.xlane.xlu1 %210  ;;  %v213_v8 = vpop.xlane.xlu0 %212 }
 0x1fc   :  { %326 = vlog2.f32 %v211_v7 }
 0x1fd   :  { %328 = vlog2.f32 %v213_v8 }
 0x1ff   :  { %v219_v9 = vpop.xlane.xlu1 %218 }
 0x200   :  { %v209_v10 = vpop.xlane.xlu0 %208  ;;  %330 = vlog2.f32 %v219_v9 }
 0x201   :  { %v321_v11 = vpop.eup %320  ;;  %332 = vlog2.f32 %v209_v10 }
 0x202   :  { %v223_v12 = vmul.f32 0.6931472, %v321_v11 }
 0x204   :  { %v217_v13 = vpop.xlane.xlu0 %216  ;;  %v237_v14 = vsub.f32 %v426_v39, %v223_v12 }
 0x205   :  { %334 = vlog2.f32 %v217_v13  ;;  %v323_v15 = vpop.eup %322 }
 0x206   :  { %v325_v16 = vpop.eup %324  ;;  %245 = vst [vmem:[%s483_s3 + $0x8] sm:$0xff] %v237_v14  ;;  %v231_v17 = vmul.f32 0.6931472, %v323_v15 }
 0x207   :  { %v221_v18 = vmul.f32 0.6931472, %v325_v16 }
 0x208   :  { %v241_v19 = vsub.f32 %v424_v38, %v231_v17 }
 0x209   :  { %v327_v20 = vpop.eup %326  ;;  %v236_v21 = vsub.f32 %v432_v45, %v221_v18 }
 0x20a   :  { %v329_v22 = vpop.eup %328  ;;  %249 = vst [vmem:[%s483_s3 + $0x28] sm:$0xff] %v241_v19  ;;  %v227_v23 = vmul.f32 0.6931472, %v327_v20 }
 0x20b   :  { %244 = vst [vmem:[%s483_s3] sm:$0xff] %v236_v21  ;;  %v229_v24 = vmul.f32 0.6931472, %v329_v22 }
 0x20c   :  { %v239_v25 = vsub.f32 %v430_v44, %v227_v23 }
 0x20d   :  { %v331_v26 = vpop.eup %330  ;;  %v240_v27 = vsub.f32 %v436_v50, %v229_v24 }
 0x20e   :  { %v333_v28 = vpop.eup %332  ;;  %247 = vst [vmem:[%s483_s3 + $0x18] sm:$0xff] %v239_v25  ;;  %v235_v29 = vmul.f32 0.6931472, %v331_v26 }
 0x20f   :  { %248 = vst [vmem:[%s483_s3 + $0x20] sm:$0xff] %v240_v27  ;;  %v225_v30 = vmul.f32 0.6931472, %v333_v28 }
 0x210   :  { %v243_v31 = vsub.f32 %v441_v55, %v235_v29 }
 0x211   :  { %v238_v33 = vsub.f32 %v438_v51, %v225_v30 }
 0x212   :  { %v335_v32 = vpop.eup %334  ;;  %251 = vst [vmem:[%s483_s3 + $0x38] sm:$0xff] %v243_v31 }
 0x213   :  { %v233_v34 = vmul.f32 0.6931472, %v335_v32  ;;  %246 = vst [vmem:[%s483_s3 + $0x10] sm:$0xff] %v238_v33 }
 0x215   :  { %v242_v35 = vsub.f32 %v444_v57, %v233_v34 }
 0x217   :  { %250 = vst [vmem:[%s483_s3 + $0x30] sm:$0xff] %v242_v35 }

// kernel: basic_decoder_forward.2
= control target key start
LH: loop header
LB: loop body
LE: loop exit
PB: predicated region body
PF: predicated region fallthrough
CT: control target
= control target key end

     0   :  { %v3152_v0 = vmov 0.0   ;;  %vm3153_vm0 = vmmov 0   ;;  %vm208_vm1 = vcmask 130048   ;;  %vm63_vm2 = vcmask 261120   ;;  %s3155_s20 = smov 64   ;;  %s3831_s2 = inlined_call_operand.vmem [shape: f32[32,128], index: 2, kind: input, shape index: {}]   ;;  %s3832_s3 = inlined_call_operand.vmem [shape: f32[16,128], index: 3, kind: input, shape index: {}]   ;;  %s3833_s1 = inlined_call_operand.vmem [shape: f32[8,16], index: 1, kind: input, shape index: {}]   ;;  %s3834_s4 = inlined_call_operand.vmem [shape: f32[32,128], index: 4, kind: input, shape index: {}]   ;;  %s3835_s0 = inlined_call_operand.vmem [shape: f32[64,32], index: 0, kind: input, shape index: {}]   ;;  %s3836_s5 = inlined_call_operand.vmem [shape: f32[1,128], index: 5, kind: input, shape index: {}]   ;;  %s3837_s6 = inlined_call_operand.vmem [shape: f32[32,128], index: 6, kind: input, shape index: {}]   ;;  %s3838_s7 = inlined_call_operand.vmem [shape: f32[32,128], index: 7, kind: input, shape index: {}]   ;;  %s3839_s8 = inlined_call_operand.vmem [shape: f32[1,128], index: 8, kind: input, shape index: {}]   ;;  %s3840_s9 = inlined_call_operand.vmem [shape: f32[64,32], index: 9, kind: output, shape index: {0}]   ;;  %s3841_s10 = inlined_call_operand.vmem [shape: f32[2,8,32], index: 10, kind: output, shape index: {1}]   ;;  %s3842_s11 = inlined_call_operand.vmem [shape: f32[2,8,32], index: 11, kind: output, shape index: {2}]  }
   0x1   :  { %2735 = vmatprep.subr.mxu1 %v3152_v0  ;;  %v38_v1 = vld [vmem:[%s3831_s2 + $0x18] sm:$0xff]  ;;  %v40_v2 = vld [vmem:[%s3832_s3 + $0x8] sm:$0xff]  ;;  %v37_v3 = vld [vmem:[%s3831_s2 + $0x10] sm:$0xff]  ;;  %2739 = vmatprep.mubr.msk.f32.mxu1 %vm3153_vm0, %v3152_v0 }
   0x2   :  { %2715 = vmatprep.subr.mxu0 %v38_v1  ;;  %2736 = vmatpush3.msra.mxu1 %v40_v2  ;;  %v39_v4 = vld [vmem:[%s3832_s3] sm:$0xff]  ;;  %v36_v6 = vld [vmem:[%s3831_s2 + $0x8] sm:$0xff]  ;;  %v3242_v7 = vld [vmem:[%s3834_s4 + $0x18] sm:$0xff] }
   0x3   :  { %v201_v5 = vld [vmem:[%s3833_s1] sm:$0xff]  ;;  %2716 = vmatpush3.msra.mxu0 %v38_v1  ;;  %2737 = vmatprep.subr.mxu1 %v3152_v0  ;;  %v3251_v9 = vld [vmem:[%s3834_s4 + $0x10] sm:$0xff]  ;;  %v56_v11 = vld [vmem:[%s3835_s0 + $0x8] sm:$0xff] }
   0x4   :  { %2717 = vmatprep.subr.mxu0 %v37_v3  ;;  %2738 = vmatpush3.msra.mxu1 %v39_v4  ;;  %v35_v8 = vld [vmem:[%s3831_s2] sm:$0xff]  ;;  %v3264_v12 = vld [vmem:[%s3834_s4 + $0x8] sm:$0xff]  ;;  %v57_v14 = vld [vmem:[%s3835_s0 + $0x10] sm:$0xff] }
   0x5   :  { %2718 = vmatpush3.msra.mxu0 %v37_v3  ;;  %2740 = vmatmul.mubr.msk.f32.vlgmr.msra.gmra.mxu1 %vm208_vm1, %v201_v5  ;;  %v55_v10 = vld [vmem:[%s3835_s0] sm:$0xff]  ;;  %v58_v15 = vld [vmem:[%s3835_s0 + $0x18] sm:$0xff]  ;;  %v60_v17 = vld [vmem:[%s3835_s0 + $0x28] sm:$0xff] }
   0x6   :  { %2742 = vmatprep.subr.mxu1 %v3152_v0  ;;  %2719 = vmatprep.subr.mxu0 %v36_v6  ;;  %v3272_v13 = vld [vmem:[%s3834_s4] sm:$0xff]  ;;  %v61_v18 = vld [vmem:[%s3835_s0 + $0x30] sm:$0xff]  ;;  %v62_v19 = vld [vmem:[%s3835_s0 + $0x38] sm:$0xff] }
   0x7   :  { %2743 = vmatpush3.msra.mxu1 %v3242_v7  ;;  %2720 = vmatpush3.msra.mxu0 %v36_v6  ;;  %v59_v16 = vld [vmem:[%s3835_s0 + $0x20] sm:$0xff]  ;;  %s3154_s0 = smov 32   ;;  %v3351_v51 = vld [vmem:[%s3837_s6 + $0x18] sm:$0xff]  ;;  %v3356_v52 = vld [vmem:[%s3837_s6 + $0x10] sm:$0xff] }
   0x8   :  { %2744 = vmatprep.subr.mxu1 %v3152_v0  ;;  %2721 = vmatprep.subr.mxu0 %v35_v8  ;;  %v2530_v20 = vld [vmem:[%s3836_s5] ss:$0 sm:$0xff]  ;;  %v3363_v53 = vld [vmem:[%s3837_s6 + $0x8] sm:$0xff]  ;;  %v3381_v58 = vld [vmem:[%s3838_s7 + $0x18] sm:$0xff] }
   0x9   :  { %2745 = vmatpush3.msra.mxu1 %v3251_v9  ;;  %2722 = vmatpush3.msra.mxu0 %v35_v8  ;;  %v3370_v54 = vld [vmem:[%s3837_s6] sm:$0xff]  ;;  %v3388_v60 = vld [vmem:[%s3838_s7 + $0x10] sm:$0xff]  ;;  %v3397_v61 = vld [vmem:[%s3838_s7 + $0x8] sm:$0xff] }
   0xa   :  { %2723 = vmatprep.mubr.msk.f32.mxu0 %vm63_vm2, %v55_v10  ;;  %2746 = vmatprep.subr.mxu1 %v3152_v0  ;;  %v3406_v62 = vld [vmem:[%s3838_s7] sm:$0xff] }
   0xb   :  { %2724 = vmatmul.mubr.msk.f32.vlgmr.msra.gmra.mxu0 %vm63_vm2, %v56_v11  ;;  %2747 = vmatpush3.msra.mxu1 %v3264_v12  ;;  %v3437_v6 = vld [vmem:[%s3839_s8] ss:$0 sm:$0xff] }
   0xc   :  { %2748 = vmatprep.subr.mxu1 %v3152_v0  ;;  %2750 = vmatprep.mubr.msk.f32.mxu1 %vm3153_vm0, %v3152_v0 }
   0xd   :  { %2749 = vmatpush3.msra.mxu1 %v3272_v13  ;;  %2726 = vmatprep.mubr.msk.f32.mxu0 %vm63_vm2, %v57_v14 }
   0xe   :  { %2751 = vmatmul.mubr.f32.vlgmr.msra.gmra.mxu1 %v3152_v0  ;;  %2764 = vmatprep.subr.mxu0 %v3152_v0 }
   0xf   :  { %2727 = vmatmul.mubr.msk.f32.gmra.mxu0 %vm63_vm2, %v58_v15  ;;  %2753 = vmatprep.subr.mxu1 %v3152_v0 }
  0x10   :  { %2729 = vmatprep.mubr.msk.f32.mxu0 %vm63_vm2, %v59_v16  ;;  %2754 = vmatpush3.msra.mxu1 %v3242_v7 }
  0x11   :  { %2755 = vmatprep.subr.mxu1 %v3152_v0  ;;  %2761 = vmatprep.mubr.msk.f32.mxu1 %vm3153_vm0, %v3152_v0 }
  0x12   :  { %2756 = vmatpush3.msra.mxu1 %v3251_v9  ;;  %2765 = vmatpush3.msra.mxu0 %v3351_v51 }
  0x13   :  { %2730 = vmatmul.mubr.msk.f32.gmra.mxu0 %vm63_vm2, %v60_v17  ;;  %2757 = vmatprep.subr.mxu1 %v3152_v0 }
  0x14   :  { %2732 = vmatprep.mubr.msk.f32.mxu0 %vm63_vm2, %v61_v18  ;;  %2758 = vmatpush3.msra.mxu1 %v3264_v12 }
  0x15   :  { %2759 = vmatprep.subr.mxu1 %v3152_v0  ;;  %2766 = vmatprep.subr.mxu0 %v3152_v0 }
  0x16   :  { %2760 = vmatpush3.msra.mxu1 %v3272_v13  ;;  %2767 = vmatpush3.msra.mxu0 %v3356_v52 }
  0x17   :  { %2733 = vmatmul.mubr.msk.f32.gmra.mxu0 %vm63_vm2, %v62_v19  ;;  %2775 = vmatprep.subr.mxu1 %v3152_v0 }
  0x18   :  { %2772 = vmatprep.mubr.msk.f32.mxu0 %vm3153_vm0, %v3152_v0  ;;  %2768 = vmatprep.subr.mxu0 %v3152_v0 }
  0x19   :  { %2769 = vmatpush3.msra.mxu0 %v3363_v53 }
  0x1a   :  { %2770 = vmatprep.subr.mxu0 %v3152_v0 }
  0x1b   :  { %2771 = vmatpush3.msra.mxu0 %v3370_v54 }
  0x1c   :  { %2786 = vmatprep.subr.mxu0 %v3152_v0 }
  0xc5   :  { %v278_v21 = vpop.f32.mrf.mxu1 }
  0xc6   :  { %v3322_v23 = vadd.f32 %v2530_v20, %v278_v21 }
  0xc7   :  { %v2741_v22 = vpop.f32.mrf.mxu1 }
  0xcb   :  { %v2725_v24 = vpop.f32.mrf.mxu0 }
  0xcc   :  { %v3325_v25 = vadd.f32 %v2725_v24, %v3322_v23 }
  0xcd   :  { %v154_v26 = vpop.f32.mrf.mxu0 }
  0xce   :  { %v283_v27 = vadd.f32 %v3322_v23, %v154_v26  ;;  %v353_v28 = vpop.f32.mrf.mxu1 }
  0xcf   :  { %v2728_v29 = vpop.f32.mrf.mxu0 }
  0xd0   :  { %v357_v30 = vadd.f32 %v353_v28, %v283_v27  ;;  %v3329_v31 = vadd.f32 %v2728_v29, %v3322_v23  ;;  %v2752_v32 = vpop.f32.mrf.mxu1 }
  0xd1   :  { %v164_v33 = vpop.f32.mrf.mxu0 }
  0xd2   :  { %3011 = vtanh.f32 %v357_v30  ;;  %v3332_v34 = vadd.f32 %v3322_v23, %v164_v33  ;;  %v2532_v42 = vmul.f32 -1.442695, %v357_v30 }
  0xd3   :  { %v2731_v35 = vpop.f32.mrf.mxu0 }
  0xd4   :  { %v3335_v36 = vadd.f32 %v2731_v35, %v3322_v23  ;;  %3013 = vpow2.f32 %v2532_v42 }
  0xd5   :  { %v174_v37 = vpop.f32.mrf.mxu0 }
  0xd6   :  { %v3338_v38 = vadd.f32 %v3322_v23, %v174_v37 }
  0xd7   :  { %v2734_v39 = vpop.f32.mrf.mxu0 }
  0xd8   :  { %v3341_v40 = vadd.f32 %v2734_v39, %v3322_v23 }
  0xd9   :  { %v3431_v63 = vpop.f32.mrf.mxu0 }
  0xdf   :  { %v3012_v41 = vpop.eup %3011 }
  0xe0   :  { %367 = vrot.lane.b32.xlu0 %v3012_v41, %s3154_s0 }
  0xe1   :  { %v3014_v43 = vpop.eup %3013 }
  0xe2   :  { %v361_v44 = vadd.f32 1.0, %v3014_v43 }
  0xe4   :  { %3015 = vrcp.f32 %v361_v44 }
  0xf1   :  { %v3016_v45 = vpop.eup %3015 }
  0xf2   :  { %v365_v48 = vmul.f32 0.0, %v3016_v45 }
 0x152   :  { %v368_v46 = vpop.permute.xlu0 %367 }
 0x153   :  { %v370_v47 = vmul.f32 %v3016_v45, %v368_v46 }
 0x155   :  { %372 = vrot.lane.b32.xlu0 %v370_v47, %s3154_s0 }
 0x1c7   :  { %v373_v49 = vpop.permute.xlu0 %372 }
 0x1c8   :  { %v3345_v50 = vadd.f32 %v373_v49, %v365_v48 }
 0x1ca   :  { %3017 = vtanh.f32 %v3345_v50 }
 0x1d7   :  { %v3018_v55 = vpop.eup %3017 }
 0x1d8   :  { %378 = vrot.lane.b32.xlu1 %v3018_v55, %s3154_s0 }
 0x24a   :  { %v379_v56 = vpop.permute.xlu1 %378 }
 0x24b   :  { %v381_v57 = vmul.f32 %v3016_v45, %v379_v56 }
 0x24d   :  { %386 = vrot.lane.b32.xlu1 %v381_v57, %s3155_s20 }
 0x2bf   :  { %v387_v59 = vpop.permute.xlu1 %386 }
 0x2c0   :  { %2762 = vmatmul.mubr.msk.f32.vlgmr.msra.gmra.mxu1 %vm63_vm2, %v387_v59  ;;  %2773 = vmatmul.mubr.msk.f32.vlgmr.msra.gmra.mxu0 %vm63_vm2, %v387_v59 }
 0x2c1   :  { %2776 = vmatpush3.msra.mxu1 %v3381_v58  ;;  %2783 = vmatprep.mubr.msk.f32.mxu1 %vm3153_vm0, %v3152_v0 }
 0x2c2   :  { %2777 = vmatprep.subr.mxu1 %v3152_v0  ;;  %2787 = vmatpush3.msra.mxu0 %v3242_v7 }
 0x2c3   :  { %2778 = vmatpush3.msra.mxu1 %v3388_v60  ;;  %2788 = vmatprep.subr.mxu0 %v3152_v0 }
 0x2c4   :  { %2779 = vmatprep.subr.mxu1 %v3152_v0  ;;  %2789 = vmatpush3.msra.mxu0 %v3251_v9 }
 0x2c5   :  { %2780 = vmatpush3.msra.mxu1 %v3397_v61  ;;  %2790 = vmatprep.subr.mxu0 %v3152_v0 }
 0x2c6   :  { %2781 = vmatprep.subr.mxu1 %v3152_v0  ;;  %2791 = vmatpush3.msra.mxu0 %v3264_v12 }
 0x2c7   :  { %2782 = vmatpush3.msra.mxu1 %v3406_v62  ;;  %2792 = vmatprep.subr.mxu0 %v3152_v0 }
 0x2c8   :  { %2784 = vmatmul.mubr.f32.vlgmr.msra.gmra.mxu1 %v3152_v0  ;;  %2797 = vmatprep.subr.mxu1 %v3152_v0 }
 0x2c9   :  { %2798 = vmatpush3.msra.mxu1 %v3351_v51  ;;  %2793 = vmatpush3.msra.mxu0 %v3272_v13 }
 0x2ca   :  { %2799 = vmatprep.subr.mxu1 %v3152_v0  ;;  %2794 = vmatprep.mubr.msk.f32.mxu0 %vm3153_vm0, %v3152_v0 }
 0x2cb   :  { %2800 = vmatpush3.msra.mxu1 %v3356_v52  ;;  %2805 = vmatprep.mubr.msk.f32.mxu1 %vm3153_vm0, %v3152_v0 }
 0x2cc   :  { %2801 = vmatprep.subr.mxu1 %v3152_v0  ;;  %2808 = vmatprep.subr.mxu0 %v3152_v0 }
 0x2cd   :  { %2802 = vmatpush3.msra.mxu1 %v3363_v53 }
 0x2ce   :  { %2803 = vmatprep.subr.mxu1 %v3152_v0 }
 0x2cf   :  { %2804 = vmatpush3.msra.mxu1 %v3370_v54 }
 0x2d0   :  { %2819 = vmatprep.subr.mxu1 %v3152_v0 }
 0x380   :  { %v456_v1 = vpop.f32.mrf.mxu1  ;;  %v557_v2 = vpop.f32.mrf.mxu0 }
 0x381   :  { %v460_v3 = vadd.f32 %v456_v1, %v3325_v25  ;;  %v558_v8 = vadd.f32 %v3437_v6, %v557_v2 }
 0x382   :  { %v2763_v4 = vpop.f32.mrf.mxu1  ;;  %v2774_v5 = vpop.f32.mrf.mxu0 }
 0x383   :  { %3019 = vtanh.f32 %v460_v3  ;;  %v2534_v17 = vmul.f32 -1.442695, %v460_v3 }
 0x388   :  { %v627_v10 = vpop.f32.mrf.mxu1 }
 0x389   :  { %v631_v11 = vadd.f32 %v627_v10, %v558_v8 }
 0x38a   :  { %v2785_v14 = vpop.f32.mrf.mxu1 }
 0x38b   :  { %3021 = vtanh.f32 %v631_v11  ;;  %v2537_v18 = vmul.f32 -1.442695, %v631_v11 }
 0x38c   :  { %3023 = vpow2.f32 %v2534_v17 }
 0x38d   :  { %3025 = vpow2.f32 %v2537_v18 }
 0x390   :  { %v3020_v15 = vpop.eup %3019 }
 0x391   :  { %470 = vrot.lane.b32.xlu0 %v3020_v15, %s3154_s0 }
 0x398   :  { %v3022_v16 = vpop.eup %3021 }
 0x399   :  { %641 = vrot.lane.b32.xlu1 %v3022_v16, %s3154_s0  ;;  %v3024_v19 = vpop.eup %3023 }
 0x39a   :  { %v464_v20 = vadd.f32 1.0, %v3024_v19  ;;  %v3026_v21 = vpop.eup %3025 }
 0x39b   :  { %v635_v22 = vadd.f32 1.0, %v3026_v21 }
 0x39c   :  { %3027 = vrcp.f32 %v464_v20 }
 0x39d   :  { %3029 = vrcp.f32 %v635_v22 }
 0x3a9   :  { %v3028_v24 = vpop.eup %3027 }
 0x3aa   :  { %v3030_v27 = vpop.eup %3029  ;;  %v468_v30 = vmul.f32 %v3028_v24, %v3345_v50 }
 0x3ab   :  { %v639_v35 = vmul.f32 0.0, %v3030_v27 }
 0x403   :  { %v471_v25 = vpop.permute.xlu0 %470 }
 0x404   :  { %v473_v26 = vmul.f32 %v3028_v24, %v471_v25 }
 0x406   :  { %475 = vrot.lane.b32.xlu0 %v473_v26, %s3154_s0 }
 0x40b   :  { %v642_v28 = vpop.permute.xlu1 %641 }
 0x40c   :  { %v644_v29 = vmul.f32 %v3030_v27, %v642_v28 }
 0x40e   :  { %646 = vrot.lane.b32.xlu1 %v644_v29, %s3154_s0 }
 0x478   :  { %v476_v32 = vpop.permute.xlu0 %475 }
 0x479   :  { %v3445_v33 = vadd.f32 %v476_v32, %v468_v30 }
 0x47b   :  { %3031 = vtanh.f32 %v3445_v33 }
 0x480   :  { %v647_v37 = vpop.permute.xlu1 %646 }
 0x481   :  { %v3448_v39 = vadd.f32 %v647_v37, %v639_v35 }
 0x483   :  { %3033 = vtanh.f32 %v3448_v39 }
 0x488   :  { %v3032_v41 = vpop.eup %3031 }
 0x489   :  { %481 = vrot.lane.b32.xlu0 %v3032_v41, %s3154_s0 }
 0x490   :  { %v3034_v42 = vpop.eup %3033 }
 0x491   :  { %652 = vrot.lane.b32.xlu1 %v3034_v42, %s3154_s0 }
 0x4fb   :  { %v482_v43 = vpop.permute.xlu0 %481 }
 0x4fc   :  { %v484_v44 = vmul.f32 %v3028_v24, %v482_v43 }
 0x4fe   :  { %665 = vrot.lane.b32.xlu0 %v484_v44, %s3155_s20 }
 0x503   :  { %v653_v45 = vpop.permute.xlu1 %652 }
 0x504   :  { %v655_v46 = vmul.f32 %v3030_v27, %v653_v45 }
 0x506   :  { %657 = vrot.lane.b32.xlu1 %v655_v46, %s3155_s20 }
 0x570   :  { %v666_v47 = vpop.permute.xlu0 %665 }
 0x571   :  { %2795 = vmatmul.mubr.msk.f32.vlgmr.msra.gmra.mxu0 %vm63_vm2, %v666_v47  ;;  %2806 = vmatmul.mubr.msk.f32.vlgmr.msra.gmra.mxu1 %vm63_vm2, %v666_v47 }
 0x572   :  { %2809 = vmatpush3.msra.mxu0 %v3381_v58  ;;  %2816 = vmatprep.mubr.msk.f32.mxu0 %vm3153_vm0, %v3152_v0 }
 0x573   :  { %2810 = vmatprep.subr.mxu0 %v3152_v0  ;;  %2820 = vmatpush3.msra.mxu1 %v3242_v7 }
 0x574   :  { %2811 = vmatpush3.msra.mxu0 %v3388_v60  ;;  %2821 = vmatprep.subr.mxu1 %v3152_v0 }
 0x575   :  { %2812 = vmatprep.subr.mxu0 %v3152_v0  ;;  %2822 = vmatpush3.msra.mxu1 %v3251_v9 }
 0x576   :  { %2813 = vmatpush3.msra.mxu0 %v3397_v61  ;;  %2823 = vmatprep.subr.mxu1 %v3152_v0 }
 0x577   :  { %2814 = vmatprep.subr.mxu0 %v3152_v0  ;;  %2824 = vmatpush3.msra.mxu1 %v3264_v12 }
 0x578   :  { %2815 = vmatpush3.msra.mxu0 %v3406_v62  ;;  %v658_v48 = vpop.permute.xlu1 %657  ;;  %2825 = vmatprep.subr.mxu1 %v3152_v0 }
 0x579   :  { %660 = vst.msk [vmem:[%s3840_s9] sm:$0xff] %vm63_vm2, %v658_v48  ;;  %2817 = vmatmul.mubr.msk.f32.vlgmr.msra.gmra.mxu0 %vm63_vm2, %v658_v48  ;;  %2830 = vmatprep.subr.mxu0 %v3152_v0 }
 0x57a   :  { %2831 = vmatpush3.msra.mxu0 %v3351_v51  ;;  %2826 = vmatpush3.msra.mxu1 %v3272_v13 }
 0x57b   :  { %2832 = vmatprep.subr.mxu0 %v3152_v0  ;;  %2827 = vmatprep.mubr.msk.f32.mxu1 %vm3153_vm0, %v3152_v0 }
 0x57c   :  { %2833 = vmatpush3.msra.mxu0 %v3356_v52  ;;  %2838 = vmatprep.mubr.msk.f32.mxu0 %vm3153_vm0, %v3152_v0 }
 0x57d   :  { %2834 = vmatprep.subr.mxu0 %v3152_v0  ;;  %2841 = vmatprep.subr.mxu1 %v3152_v0 }
 0x57e   :  { %2835 = vmatpush3.msra.mxu0 %v3363_v53 }
 0x57f   :  { %2836 = vmatprep.subr.mxu0 %v3152_v0 }
 0x580   :  { %2837 = vmatpush3.msra.mxu0 %v3370_v54 }
 0x581   :  { %2852 = vmatprep.subr.mxu0 %v3152_v0 }
 0x631   :  { %v735_v49 = vpop.f32.mrf.mxu0  ;;  %v830_v50 = vpop.f32.mrf.mxu1 }
 0x632   :  { %v739_v55 = vadd.f32 %v735_v49, %v3332_v34  ;;  %v831_v59 = vadd.f32 %v3437_v6, %v830_v50 }
 0x633   :  { %v2796_v56 = vpop.f32.mrf.mxu0  ;;  %v2807_v57 = vpop.f32.mrf.mxu1 }
 0x634   :  { %3035 = vtanh.f32 %v739_v55  ;;  %v2539_v8 = vmul.f32 -1.442695, %v739_v55 }
 0x639   :  { %v902_v1 = vpop.f32.mrf.mxu0 }
 0x63a   :  { %v906_v2 = vadd.f32 %v902_v1, %v831_v59 }
 0x63b   :  { %v2818_v3 = vpop.f32.mrf.mxu0 }
 0x63c   :  { %3037 = vtanh.f32 %v906_v2  ;;  %v2542_v10 = vmul.f32 -1.442695, %v906_v2 }
 0x63d   :  { %3039 = vpow2.f32 %v2539_v8 }
 0x63e   :  { %3041 = vpow2.f32 %v2542_v10 }
 0x641   :  { %v3036_v4 = vpop.eup %3035 }
 0x642   :  { %749 = vrot.lane.b32.xlu0 %v3036_v4, %s3154_s0 }
 0x649   :  { %v3038_v5 = vpop.eup %3037 }
 0x64a   :  { %916 = vrot.lane.b32.xlu1 %v3038_v5, %s3154_s0  ;;  %v3040_v34 = vpop.eup %3039 }
 0x64b   :  { %v743_v11 = vadd.f32 1.0, %v3040_v34  ;;  %v3042_v14 = vpop.eup %3041 }
 0x64c   :  { %v910_v15 = vadd.f32 1.0, %v3042_v14 }
 0x64d   :  { %3043 = vrcp.f32 %v743_v11 }
 0x64e   :  { %3045 = vrcp.f32 %v910_v15 }
 0x65a   :  { %v3044_v16 = vpop.eup %3043 }
 0x65b   :  { %v3046_v19 = vpop.eup %3045  ;;  %v747_v22 = vmul.f32 %v3044_v16, %v3445_v33 }
 0x65c   :  { %v914_v26 = vmul.f32 %v3046_v19, %v3448_v39 }
 0x6b4   :  { %v750_v17 = vpop.permute.xlu0 %749 }
 0x6b5   :  { %v752_v18 = vmul.f32 %v3044_v16, %v750_v17 }
 0x6b7   :  { %754 = vrot.lane.b32.xlu0 %v752_v18, %s3154_s0 }
 0x6bc   :  { %v917_v20 = vpop.permute.xlu1 %916 }
 0x6bd   :  { %v919_v21 = vmul.f32 %v3046_v19, %v917_v20 }
 0x6bf   :  { %921 = vrot.lane.b32.xlu1 %v919_v21, %s3154_s0 }
 0x729   :  { %v755_v24 = vpop.permute.xlu0 %754 }
 0x72a   :  { %v3499_v25 = vadd.f32 %v755_v24, %v747_v22 }
 0x72c   :  { %3047 = vtanh.f32 %v3499_v25 }
 0x731   :  { %v922_v27 = vpop.permute.xlu1 %921 }
 0x732   :  { %v3503_v28 = vadd.f32 %v922_v27, %v914_v26 }
 0x734   :  { %3049 = vtanh.f32 %v3503_v28 }
 0x739   :  { %v3048_v29 = vpop.eup %3047 }
 0x73a   :  { %760 = vrot.lane.b32.xlu0 %v3048_v29, %s3154_s0 }
 0x741   :  { %v3050_v30 = vpop.eup %3049 }
 0x742   :  { %927 = vrot.lane.b32.xlu1 %v3050_v30, %s3154_s0 }
 0x7ac   :  { %v761_v32 = vpop.permute.xlu0 %760 }
 0x7ad   :  { %v763_v33 = vmul.f32 %v3044_v16, %v761_v32 }
 0x7af   :  { %941 = vrot.lane.b32.xlu0 %v763_v33, %s3155_s20 }
 0x7b4   :  { %v928_v35 = vpop.permute.xlu1 %927 }
 0x7b5   :  { %v930_v37 = vmul.f32 %v3046_v19, %v928_v35 }
 0x7b7   :  { %932 = vrot.lane.b32.xlu1 %v930_v37, %s3155_s20 }
 0x821   :  { %v942_v39 = vpop.permute.xlu0 %941 }
 0x822   :  { %2828 = vmatmul.mubr.msk.f32.vlgmr.msra.gmra.mxu1 %vm63_vm2, %v942_v39  ;;  %2839 = vmatmul.mubr.msk.f32.vlgmr.msra.gmra.mxu0 %vm63_vm2, %v942_v39 }
 0x823   :  { %2842 = vmatpush3.msra.mxu1 %v3381_v58  ;;  %2849 = vmatprep.mubr.msk.f32.mxu1 %vm3153_vm0, %v3152_v0 }
 0x824   :  { %2843 = vmatprep.subr.mxu1 %v3152_v0  ;;  %2853 = vmatpush3.msra.mxu0 %v3242_v7 }
 0x825   :  { %2844 = vmatpush3.msra.mxu1 %v3388_v60  ;;  %2854 = vmatprep.subr.mxu0 %v3152_v0 }
 0x826   :  { %2845 = vmatprep.subr.mxu1 %v3152_v0  ;;  %2855 = vmatpush3.msra.mxu0 %v3251_v9 }
 0x827   :  { %2846 = vmatpush3.msra.mxu1 %v3397_v61  ;;  %2856 = vmatprep.subr.mxu0 %v3152_v0 }
 0x828   :  { %2847 = vmatprep.subr.mxu1 %v3152_v0  ;;  %2857 = vmatpush3.msra.mxu0 %v3264_v12 }
 0x829   :  { %2848 = vmatpush3.msra.mxu1 %v3406_v62  ;;  %v933_v41 = vpop.permute.xlu1 %932  ;;  %2858 = vmatprep.subr.mxu0 %v3152_v0 }
 0x82a   :  { %2543 = vst.msk [vmem:[%s3840_s9 + $0x8] sm:$0xff] %vm63_vm2, %v933_v41  ;;  %2850 = vmatmul.mubr.msk.f32.vlgmr.msra.gmra.mxu1 %vm63_vm2, %v933_v41  ;;  %2863 = vmatprep.subr.mxu1 %v3152_v0 }
 0x82b   :  { %2864 = vmatpush3.msra.mxu1 %v3351_v51  ;;  %2859 = vmatpush3.msra.mxu0 %v3272_v13 }
 0x82c   :  { %2865 = vmatprep.subr.mxu1 %v3152_v0  ;;  %2860 = vmatprep.mubr.msk.f32.mxu0 %vm3153_vm0, %v3152_v0 }
 0x82d   :  { %2866 = vmatpush3.msra.mxu1 %v3356_v52  ;;  %2874 = vmatprep.subr.mxu0 %v3152_v0 }
 0x82e   :  { %2867 = vmatprep.subr.mxu1 %v3152_v0  ;;  %2871 = vmatprep.mubr.msk.f32.mxu1 %vm3153_vm0, %v3152_v0 }
 0x82f   :  { %2868 = vmatpush3.msra.mxu1 %v3363_v53 }
 0x830   :  { %2869 = vmatprep.subr.mxu1 %v3152_v0 }
 0x831   :  { %2870 = vmatpush3.msra.mxu1 %v3370_v54 }
 0x832   :  { %2885 = vmatprep.subr.mxu1 %v3152_v0 }
 0x8e2   :  { %v1011_v42 = vpop.f32.mrf.mxu1  ;;  %v1106_v43 = vpop.f32.mrf.mxu0 }
 0x8e3   :  { %v1015_v44 = vadd.f32 %v1011_v42, %v3329_v31  ;;  %v1107_v47 = vadd.f32 %v3437_v6, %v1106_v43 }
 0x8e4   :  { %v2829_v45 = vpop.f32.mrf.mxu1  ;;  %v2840_v46 = vpop.f32.mrf.mxu0 }
 0x8e5   :  { %3051 = vtanh.f32 %v1015_v44  ;;  %v2545_v57 = vmul.f32 -1.442695, %v1015_v44 }
 0x8ea   :  { %v1178_v48 = vpop.f32.mrf.mxu1 }
 0x8eb   :  { %v1182_v49 = vadd.f32 %v1178_v48, %v1107_v47 }
 0x8ec   :  { %v2851_v50 = vpop.f32.mrf.mxu1 }
 0x8ed   :  { %3053 = vtanh.f32 %v1182_v49  ;;  %v2548_v59 = vmul.f32 -1.442695, %v1182_v49 }
 0x8ee   :  { %3055 = vpow2.f32 %v2545_v57 }
 0x8ef   :  { %3057 = vpow2.f32 %v2548_v59 }
 0x8f2   :  { %v3052_v55 = vpop.eup %3051 }
 0x8f3   :  { %1025 = vrot.lane.b32.xlu0 %v3052_v55, %s3154_s0 }
 0x8fa   :  { %v3054_v56 = vpop.eup %3053 }
 0x8fb   :  { %1192 = vrot.lane.b32.xlu1 %v3054_v56, %s3154_s0  ;;  %v3056_v31 = vpop.eup %3055 }
 0x8fc   :  { %v1019_v1 = vadd.f32 1.0, %v3056_v31  ;;  %v3058_v2 = vpop.eup %3057 }
 0x8fd   :  { %v1186_v3 = vadd.f32 1.0, %v3058_v2 }
 0x8fe   :  { %3059 = vrcp.f32 %v1019_v1 }
 0x8ff   :  { %3061 = vrcp.f32 %v1186_v3 }
 0x90b   :  { %v3060_v4 = vpop.eup %3059 }
 0x90c   :  { %v3062_v10 = vpop.eup %3061  ;;  %v1023_v14 = vmul.f32 %v3060_v4, %v3499_v25 }
 0x90d   :  { %v1190_v17 = vmul.f32 %v3062_v10, %v3503_v28 }
 0x965   :  { %v1026_v5 = vpop.permute.xlu0 %1025 }
 0x966   :  { %v1028_v8 = vmul.f32 %v3060_v4, %v1026_v5 }
 0x968   :  { %1030 = vrot.lane.b32.xlu0 %v1028_v8, %s3154_s0 }
 0x96d   :  { %v1193_v34 = vpop.permute.xlu1 %1192 }
 0x96e   :  { %v1195_v11 = vmul.f32 %v3062_v10, %v1193_v34 }
 0x970   :  { %1197 = vrot.lane.b32.xlu1 %v1195_v11, %s3154_s0 }
 0x9da   :  { %v1031_v15 = vpop.permute.xlu0 %1030 }
 0x9db   :  { %v3554_v16 = vadd.f32 %v1031_v15, %v1023_v14 }
 0x9dd   :  { %3063 = vtanh.f32 %v3554_v16 }
 0x9e2   :  { %v1198_v18 = vpop.permute.xlu1 %1197 }
 0x9e3   :  { %v3558_v19 = vadd.f32 %v1198_v18, %v1190_v17 }
 0x9e5   :  { %3065 = vtanh.f32 %v3558_v19 }
 0x9ea   :  { %v3064_v20 = vpop.eup %3063 }
 0x9eb   :  { %1036 = vrot.lane.b32.xlu0 %v3064_v20, %s3154_s0 }
 0x9f2   :  { %v3066_v21 = vpop.eup %3065 }
 0x9f3   :  { %1203 = vrot.lane.b32.xlu1 %v3066_v21, %s3154_s0 }
 0xa5d   :  { %v1037_v22 = vpop.permute.xlu0 %1036 }
 0xa5e   :  { %v1039_v24 = vmul.f32 %v3060_v4, %v1037_v22 }
 0xa60   :  { %1217 = vrot.lane.b32.xlu0 %v1039_v24, %s3155_s20 }
 0xa65   :  { %v1204_v25 = vpop.permute.xlu1 %1203 }
 0xa66   :  { %v1206_v26 = vmul.f32 %v3062_v10, %v1204_v25 }
 0xa68   :  { %1208 = vrot.lane.b32.xlu1 %v1206_v26, %s3155_s20 }
 0xad2   :  { %v1218_v27 = vpop.permute.xlu0 %1217 }
 0xad3   :  { %2861 = vmatmul.mubr.msk.f32.vlgmr.msra.gmra.mxu0 %vm63_vm2, %v1218_v27  ;;  %2872 = vmatmul.mubr.msk.f32.vlgmr.msra.gmra.mxu1 %vm63_vm2, %v1218_v27 }
 0xad4   :  { %2875 = vmatpush3.msra.mxu0 %v3381_v58  ;;  %2882 = vmatprep.mubr.msk.f32.mxu0 %vm3153_vm0, %v3152_v0 }
 0xad5   :  { %2876 = vmatprep.subr.mxu0 %v3152_v0  ;;  %2886 = vmatpush3.msra.mxu1 %v3242_v7 }
 0xad6   :  { %2877 = vmatpush3.msra.mxu0 %v3388_v60  ;;  %2887 = vmatprep.subr.mxu1 %v3152_v0 }
 0xad7   :  { %2878 = vmatprep.subr.mxu0 %v3152_v0  ;;  %2888 = vmatpush3.msra.mxu1 %v3251_v9 }
 0xad8   :  { %2879 = vmatpush3.msra.mxu0 %v3397_v61  ;;  %2889 = vmatprep.subr.mxu1 %v3152_v0 }
 0xad9   :  { %2880 = vmatprep.subr.mxu0 %v3152_v0  ;;  %2890 = vmatpush3.msra.mxu1 %v3264_v12 }
 0xada   :  { %2881 = vmatpush3.msra.mxu0 %v3406_v62  ;;  %v1209_v28 = vpop.permute.xlu1 %1208  ;;  %2891 = vmatprep.subr.mxu1 %v3152_v0 }
 0xadb   :  { %2549 = vst.msk [vmem:[%s3840_s9 + $0x10] sm:$0xff] %vm63_vm2, %v1209_v28  ;;  %2883 = vmatmul.mubr.msk.f32.vlgmr.msra.gmra.mxu0 %vm63_vm2, %v1209_v28  ;;  %2896 = vmatprep.subr.mxu0 %v3152_v0 }
 0xadc   :  { %2897 = vmatpush3.msra.mxu0 %v3351_v51  ;;  %2892 = vmatpush3.msra.mxu1 %v3272_v13 }
 0xadd   :  { %2898 = vmatprep.subr.mxu0 %v3152_v0  ;;  %2893 = vmatprep.mubr.msk.f32.mxu1 %vm3153_vm0, %v3152_v0 }
 0xade   :  { %2899 = vmatpush3.msra.mxu0 %v3356_v52  ;;  %2904 = vmatprep.mubr.msk.f32.mxu0 %vm3153_vm0, %v3152_v0 }
 0xadf   :  { %2900 = vmatprep.subr.mxu0 %v3152_v0  ;;  %2907 = vmatprep.subr.mxu1 %v3152_v0 }
 0xae0   :  { %2901 = vmatpush3.msra.mxu0 %v3363_v53 }
 0xae1   :  { %2902 = vmatprep.subr.mxu0 %v3152_v0 }
 0xae2   :  { %2903 = vmatpush3.msra.mxu0 %v3370_v54 }
 0xae3   :  { %2918 = vmatprep.subr.mxu0 %v3152_v0 }
 0xb93   :  { %v1287_v29 = vpop.f32.mrf.mxu0  ;;  %v1382_v30 = vpop.f32.mrf.mxu1 }
 0xb94   :  { %v1291_v32 = vadd.f32 %v1287_v29, %v3338_v38  ;;  %v1383_v37 = vadd.f32 %v3437_v6, %v1382_v30 }
 0xb95   :  { %v2862_v33 = vpop.f32.mrf.mxu0  ;;  %v2873_v35 = vpop.f32.mrf.mxu1 }
 0xb96   :  { %3067 = vtanh.f32 %v1291_v32  ;;  %v2551_v45 = vmul.f32 -1.442695, %v1291_v32 }
 0xb9b   :  { %v1454_v39 = vpop.f32.mrf.mxu0 }
 0xb9c   :  { %v1458_v41 = vadd.f32 %v1454_v39, %v1383_v37 }
 0xb9d   :  { %v2884_v42 = vpop.f32.mrf.mxu0 }
 0xb9e   :  { %3069 = vtanh.f32 %v1458_v41  ;;  %v2554_v46 = vmul.f32 -1.442695, %v1458_v41 }
 0xb9f   :  { %3071 = vpow2.f32 %v2551_v45 }
 0xba0   :  { %3073 = vpow2.f32 %v2554_v46 }
 0xba3   :  { %v3068_v43 = vpop.eup %3067 }
 0xba4   :  { %1301 = vrot.lane.b32.xlu0 %v3068_v43, %s3154_s0 }
 0xbab   :  { %v3070_v44 = vpop.eup %3069 }
 0xbac   :  { %1468 = vrot.lane.b32.xlu1 %v3070_v44, %s3154_s0  ;;  %v3072_v38 = vpop.eup %3071 }
 0xbad   :  { %v1295_v47 = vadd.f32 1.0, %v3072_v38  ;;  %v3074_v48 = vpop.eup %3073 }
 0xbae   :  { %v1462_v49 = vadd.f32 1.0, %v3074_v48 }
 0xbaf   :  { %3075 = vrcp.f32 %v1295_v47 }
 0xbb0   :  { %3077 = vrcp.f32 %v1462_v49 }
 0xbbc   :  { %v3076_v50 = vpop.eup %3075 }
 0xbbd   :  { %v3078_v57 = vpop.eup %3077  ;;  %v1299_v1 = vmul.f32 %v3076_v50, %v3554_v16 }
 0xbbe   :  { %v1466_v4 = vmul.f32 %v3078_v57, %v3558_v19 }
 0xc16   :  { %v1302_v55 = vpop.permute.xlu0 %1301 }
 0xc17   :  { %v1304_v56 = vmul.f32 %v3076_v50, %v1302_v55 }
 0xc19   :  { %1306 = vrot.lane.b32.xlu0 %v1304_v56, %s3154_s0 }
 0xc1e   :  { %v1469_v59 = vpop.permute.xlu1 %1468 }
 0xc1f   :  { %v1471_v31 = vmul.f32 %v3078_v57, %v1469_v59 }
 0xc21   :  { %1473 = vrot.lane.b32.xlu1 %v1471_v31, %s3154_s0  ;;  %v3139_v31 = vld [vmem:[%s3834_s4 + $0x18] sm:$0xff] }
 0xc8b   :  { %v1307_v2 = vpop.permute.xlu0 %1306 }
 0xc8c   :  { %v3609_v3 = vadd.f32 %v1307_v2, %v1299_v1  ;;  %v3141_v1 = vld [vmem:[%s3834_s4 + $0x8] sm:$0xff] }
 0xc8e   :  { %3079 = vtanh.f32 %v3609_v3 }
 0xc93   :  { %v1474_v5 = vpop.permute.xlu1 %1473 }
 0xc94   :  { %v3613_v8 = vadd.f32 %v1474_v5, %v1466_v4 }
 0xc96   :  { %3081 = vtanh.f32 %v3613_v8 }
 0xc9b   :  { %v3080_v10 = vpop.eup %3079 }
 0xc9c   :  { %1312 = vrot.lane.b32.xlu0 %v3080_v10, %s3154_s0 }
 0xca3   :  { %v3082_v34 = vpop.eup %3081 }
 0xca4   :  { %1479 = vrot.lane.b32.xlu1 %v3082_v34, %s3154_s0 }
 0xd0e   :  { %v1313_v11 = vpop.permute.xlu0 %1312 }
 0xd0f   :  { %v1315_v14 = vmul.f32 %v3076_v50, %v1313_v11 }
 0xd11   :  { %1493 = vrot.lane.b32.xlu0 %v1315_v14, %s3155_s20 }
 0xd16   :  { %v1480_v15 = vpop.permute.xlu1 %1479 }
 0xd17   :  { %v1482_v16 = vmul.f32 %v3078_v57, %v1480_v15 }
 0xd19   :  { %1484 = vrot.lane.b32.xlu1 %v1482_v16, %s3155_s20 }
 0xd83   :  { %v1494_v17 = vpop.permute.xlu0 %1493 }
 0xd84   :  { %2894 = vmatmul.mubr.msk.f32.vlgmr.msra.gmra.mxu1 %vm63_vm2, %v1494_v17  ;;  %2905 = vmatmul.mubr.msk.f32.vlgmr.msra.gmra.mxu0 %vm63_vm2, %v1494_v17 }
 0xd85   :  { %2908 = vmatpush3.msra.mxu1 %v3381_v58  ;;  %2915 = vmatprep.mubr.msk.f32.mxu1 %vm3153_vm0, %v3152_v0 }
 0xd86   :  { %2909 = vmatprep.subr.mxu1 %v3152_v0  ;;  %2919 = vmatpush3.msra.mxu0 %v3242_v7 }
 0xd87   :  { %2910 = vmatpush3.msra.mxu1 %v3388_v60  ;;  %2920 = vmatprep.subr.mxu0 %v3152_v0 }
 0xd88   :  { %2911 = vmatprep.subr.mxu1 %v3152_v0  ;;  %2921 = vmatpush3.msra.mxu0 %v3251_v9 }
 0xd89   :  { %2912 = vmatpush3.msra.mxu1 %v3397_v61  ;;  %2922 = vmatprep.subr.mxu0 %v3152_v0 }
 0xd8a   :  { %2913 = vmatprep.subr.mxu1 %v3152_v0  ;;  %2923 = vmatpush3.msra.mxu0 %v3264_v12 }
 0xd8b   :  { %2914 = vmatpush3.msra.mxu1 %v3406_v62  ;;  %v1485_v18 = vpop.permute.xlu1 %1484  ;;  %2924 = vmatprep.subr.mxu0 %v3152_v0 }
 0xd8c   :  { %2555 = vst.msk [vmem:[%s3840_s9 + $0x18] sm:$0xff] %vm63_vm2, %v1485_v18  ;;  %2916 = vmatmul.mubr.msk.f32.vlgmr.msra.gmra.mxu1 %vm63_vm2, %v1485_v18  ;;  %2929 = vmatprep.subr.mxu1 %v3152_v0 }
 0xd8d   :  { %2930 = vmatpush3.msra.mxu1 %v3351_v51  ;;  %2925 = vmatpush3.msra.mxu0 %v3272_v13 }
 0xd8e   :  { %2931 = vmatprep.subr.mxu1 %v3152_v0  ;;  %2926 = vmatprep.mubr.msk.f32.mxu0 %vm3153_vm0, %v3152_v0 }
 0xd8f   :  { %2932 = vmatpush3.msra.mxu1 %v3356_v52  ;;  %2940 = vmatprep.subr.mxu0 %v3152_v0 }
 0xd90   :  { %2933 = vmatprep.subr.mxu1 %v3152_v0  ;;  %2937 = vmatprep.mubr.msk.f32.mxu1 %vm3153_vm0, %v3152_v0 }
 0xd91   :  { %2934 = vmatpush3.msra.mxu1 %v3363_v53 }
 0xd92   :  { %2935 = vmatprep.subr.mxu1 %v3152_v0 }
 0xd93   :  { %2936 = vmatpush3.msra.mxu1 %v3370_v54 }
 0xd94   :  { %2951 = vmatprep.subr.mxu1 %v3152_v0 }
 0xe44   :  { %v1563_v7 = vpop.f32.mrf.mxu1  ;;  %v1658_v9 = vpop.f32.mrf.mxu0 }
 0xe45   :  { %v1567_v12 = vadd.f32 %v1563_v7, %v3335_v36  ;;  %v1659_v20 = vadd.f32 %v3437_v6, %v1658_v9 }
 0xe46   :  { %v2895_v13 = vpop.f32.mrf.mxu1  ;;  %v2906_v19 = vpop.f32.mrf.mxu0 }
 0xe47   :  { %3083 = vtanh.f32 %v1567_v12  ;;  %v2557_v27 = vmul.f32 -1.442695, %v1567_v12 }
 0xe4c   :  { %v1730_v21 = vpop.f32.mrf.mxu1 }
 0xe4d   :  { %v1734_v22 = vadd.f32 %v1730_v21, %v1659_v20 }
 0xe4e   :  { %v2917_v24 = vpop.f32.mrf.mxu1 }
 0xe4f   :  { %3085 = vtanh.f32 %v1734_v22  ;;  %v2560_v28 = vmul.f32 -1.442695, %v1734_v22 }
 0xe50   :  { %3087 = vpow2.f32 %v2557_v27 }
 0xe51   :  { %3089 = vpow2.f32 %v2560_v28 }
 0xe54   :  { %v3084_v25 = vpop.eup %3083 }
 0xe55   :  { %1577 = vrot.lane.b32.xlu0 %v3084_v25, %s3154_s0 }
 0xe5c   :  { %v3086_v26 = vpop.eup %3085 }
 0xe5d   :  { %1744 = vrot.lane.b32.xlu1 %v3086_v26, %s3154_s0  ;;  %v3088_v36 = vpop.eup %3087 }
 0xe5e   :  { %v1571_v29 = vadd.f32 1.0, %v3088_v36  ;;  %v3090_v30 = vpop.eup %3089 }
 0xe5f   :  { %v1738_v32 = vadd.f32 1.0, %v3090_v30 }
 0xe60   :  { %3091 = vrcp.f32 %v1571_v29 }
 0xe61   :  { %3093 = vrcp.f32 %v1738_v32 }
 0xe6d   :  { %v3092_v33 = vpop.eup %3091 }
 0xe6e   :  { %v3094_v39 = vpop.eup %3093  ;;  %v1575_v43 = vmul.f32 %v3092_v33, %v3609_v3 }
 0xe6f   :  { %v1742_v46 = vmul.f32 %v3094_v39, %v3613_v8 }
 0xec7   :  { %v1578_v35 = vpop.permute.xlu0 %1577 }
 0xec8   :  { %v1580_v37 = vmul.f32 %v3092_v33, %v1578_v35  ;;  %v3144_v35 = vld [vmem:[%s3837_s6 + $0x18] sm:$0xff] }
 0xeca   :  { %1582 = vrot.lane.b32.xlu0 %v1580_v37, %s3154_s0  ;;  %v3145_v37 = vld [vmem:[%s3838_s7 + $0x10] sm:$0xff] }
 0xecf   :  { %v1745_v41 = vpop.permute.xlu1 %1744 }
 0xed0   :  { %v1747_v42 = vmul.f32 %v3094_v39, %v1745_v41  ;;  %v3147_v41 = vld [vmem:[%s3838_s7 + $0x8] sm:$0xff] }
 0xed2   :  { %1749 = vrot.lane.b32.xlu1 %v1747_v42, %s3154_s0  ;;  %v3148_v42 = vld [vmem:[%s3837_s6 + $0x8] sm:$0xff] }
 0xf3c   :  { %v1583_v44 = vpop.permute.xlu0 %1582 }
 0xf3d   :  { %v3664_v45 = vadd.f32 %v1583_v44, %v1575_v43  ;;  %v3149_v43 = vld [vmem:[%s3838_s7] sm:$0xff] }
 0xf3f   :  { %3095 = vtanh.f32 %v3664_v45 }
 0xf44   :  { %v1750_v38 = vpop.permute.xlu1 %1749 }
 0xf45   :  { %v3668_v47 = vadd.f32 %v1750_v38, %v1742_v46 }
 0xf47   :  { %3097 = vtanh.f32 %v3668_v47 }
 0xf4c   :  { %v3096_v48 = vpop.eup %3095 }
 0xf4d   :  { %1588 = vrot.lane.b32.xlu0 %v3096_v48, %s3154_s0 }
 0xf54   :  { %v3098_v49 = vpop.eup %3097 }
 0xf55   :  { %1755 = vrot.lane.b32.xlu1 %v3098_v49, %s3154_s0 }
 0xfbf   :  { %v1589_v50 = vpop.permute.xlu0 %1588 }
 0xfc0   :  { %v1591_v55 = vmul.f32 %v3092_v33, %v1589_v50  ;;  %v3143_v33 = vld [vmem:[%s3838_s7 + $0x18] sm:$0xff] }
 0xfc2   :  { %1769 = vrot.lane.b32.xlu0 %v1591_v55, %s3155_s20 }
 0xfc7   :  { %v1756_v56 = vpop.permute.xlu1 %1755 }
 0xfc8   :  { %v1758_v57 = vmul.f32 %v3094_v39, %v1756_v56  ;;  %v3146_v39 = vld [vmem:[%s3837_s6 + $0x10] sm:$0xff] }
 0xfca   :  { %1760 = vrot.lane.b32.xlu1 %v1758_v57, %s3155_s20 }
0x1034   :  { %v1770_v59 = vpop.permute.xlu0 %1769 }
0x1035   :  { %2927 = vmatmul.mubr.msk.f32.vlgmr.msra.gmra.mxu0 %vm63_vm2, %v1770_v59  ;;  %2938 = vmatmul.mubr.msk.f32.vlgmr.msra.gmra.mxu1 %vm63_vm2, %v1770_v59 }
0x1036   :  { %2941 = vmatpush3.msra.mxu0 %v3381_v58  ;;  %2948 = vmatprep.mubr.msk.f32.mxu0 %vm3153_vm0, %v3152_v0  ;;  %v3140_v58 = vld [vmem:[%s3834_s4 + $0x10] sm:$0xff] }
0x1037   :  { %2942 = vmatprep.subr.mxu0 %v3152_v0  ;;  %2952 = vmatpush3.msra.mxu1 %v3139_v31 }
0x1038   :  { %2943 = vmatpush3.msra.mxu0 %v3388_v60  ;;  %2953 = vmatprep.subr.mxu1 %v3152_v0 }
0x1039   :  { %2944 = vmatprep.subr.mxu0 %v3152_v0  ;;  %2954 = vmatpush3.msra.mxu1 %v3140_v58 }
0x103a   :  { %2945 = vmatpush3.msra.mxu0 %v3397_v61  ;;  %2955 = vmatprep.subr.mxu1 %v3152_v0  ;;  %v3142_v61 = vld [vmem:[%s3834_s4] sm:$0xff] }
0x103b   :  { %2946 = vmatprep.subr.mxu0 %v3152_v0  ;;  %2956 = vmatpush3.msra.mxu1 %v3141_v1 }
0x103c   :  { %2947 = vmatpush3.msra.mxu0 %v3406_v62  ;;  %v1761_v60 = vpop.permute.xlu1 %1760  ;;  %2957 = vmatprep.subr.mxu1 %v3152_v0 }
0x103d   :  { %2561 = vst.msk [vmem:[%s3840_s9 + $0x20] sm:$0xff] %vm63_vm2, %v1761_v60  ;;  %2949 = vmatmul.mubr.msk.f32.vlgmr.msra.gmra.mxu0 %vm63_vm2, %v1761_v60  ;;  %2962 = vmatprep.subr.mxu0 %v3152_v0 }
0x103e   :  { %2963 = vmatpush3.msra.mxu0 %v3351_v51  ;;  %2958 = vmatpush3.msra.mxu1 %v3142_v61  ;;  %v1767_v51 = vadd.f32 %v3322_v23, %v3431_v63 }
0x103f   :  { %2964 = vmatprep.subr.mxu0 %v3152_v0  ;;  %2959 = vmatprep.mubr.msk.f32.mxu1 %vm3153_vm0, %v3152_v0 }
0x1040   :  { %2965 = vmatpush3.msra.mxu0 %v3356_v52  ;;  %2970 = vmatprep.mubr.msk.f32.mxu0 %vm3153_vm0, %v3152_v0 }
0x1041   :  { %2966 = vmatprep.subr.mxu0 %v3152_v0  ;;  %2973 = vmatprep.subr.mxu1 %v3152_v0 }
0x1042   :  { %2967 = vmatpush3.msra.mxu0 %v3363_v53 }
0x1043   :  { %2968 = vmatprep.subr.mxu0 %v3152_v0 }
0x1044   :  { %2969 = vmatpush3.msra.mxu0 %v3370_v54 }
0x1045   :  { %2984 = vmatprep.subr.mxu0 %v3152_v0 }
0x10f5   :  { %v1839_v62 = vpop.f32.mrf.mxu0  ;;  %v1934_v52 = vpop.f32.mrf.mxu1 }
0x10f6   :  { %v1843_v2 = vadd.f32 %v1839_v62, %v1767_v51  ;;  %v1935_v5 = vadd.f32 %v3437_v6, %v1934_v52 }
0x10f7   :  { %v2928_v3 = vpop.f32.mrf.mxu0  ;;  %v2939_v4 = vpop.f32.mrf.mxu1 }
0x10f8   :  { %3099 = vtanh.f32 %v1843_v2  ;;  %v2563_v11 = vmul.f32 -1.442695, %v1843_v2 }
0x10fd   :  { %v2006_v8 = vpop.f32.mrf.mxu0 }
0x10fe   :  { %v2010_v10 = vadd.f32 %v2006_v8, %v1935_v5 }
0x10ff   :  { %v2950_v53 = vpop.f32.mrf.mxu0 }
0x1100   :  { %3101 = vtanh.f32 %v2010_v10  ;;  %v2566_v23 = vmul.f32 -1.442695, %v2010_v10 }
0x1101   :  { %3103 = vpow2.f32 %v2563_v11 }
0x1102   :  { %3105 = vpow2.f32 %v2566_v23 }
0x1105   :  { %v3100_v34 = vpop.eup %3099 }
0x1106   :  { %1853 = vrot.lane.b32.xlu0 %v3100_v34, %s3154_s0 }
0x110d   :  { %v3102_v54 = vpop.eup %3101 }
0x110e   :  { %2020 = vrot.lane.b32.xlu1 %v3102_v54, %s3154_s0  ;;  %v3104_v63 = vpop.eup %3103 }
0x110f   :  { %v1847_v14 = vadd.f32 1.0, %v3104_v63  ;;  %v3106_v15 = vpop.eup %3105 }
0x1110   :  { %v2014_v16 = vadd.f32 1.0, %v3106_v15 }
0x1111   :  { %3107 = vrcp.f32 %v1847_v14 }
0x1112   :  { %3109 = vrcp.f32 %v2014_v16 }
0x111e   :  { %v3108_v17 = vpop.eup %3107 }
0x111f   :  { %v3110_v9 = vpop.eup %3109  ;;  %v1851_v19 = vmul.f32 %v3108_v17, %v3664_v45  ;;  %v3150_v45 = vld [vmem:[%s3837_s6] sm:$0xff] }
0x1120   :  { %v2018_v22 = vmul.f32 %v3110_v9, %v3668_v47 }
0x1178   :  { %v1854_v18 = vpop.permute.xlu0 %1853 }
0x1179   :  { %v1856_v7 = vmul.f32 %v3108_v17, %v1854_v18 }
0x117b   :  { %1858 = vrot.lane.b32.xlu0 %v1856_v7, %s3154_s0 }
0x1180   :  { %v2021_v12 = vpop.permute.xlu1 %2020 }
0x1181   :  { %v2023_v13 = vmul.f32 %v3110_v9, %v2021_v12 }
0x1183   :  { %2025 = vrot.lane.b32.xlu1 %v2023_v13, %s3154_s0 }
0x11ed   :  { %v1859_v20 = vpop.permute.xlu0 %1858 }
0x11ee   :  { %v3728_v21 = vadd.f32 %v1859_v20, %v1851_v19 }
0x11f0   :  { %3111 = vtanh.f32 %v3728_v21 }
0x11f5   :  { %v2026_v24 = vpop.permute.xlu1 %2025 }
0x11f6   :  { %v3732_v25 = vadd.f32 %v2026_v24, %v2018_v22 }
0x11f8   :  { %3113 = vtanh.f32 %v3732_v25 }
0x11fd   :  { %v3112_v26 = vpop.eup %3111 }
0x11fe   :  { %1864 = vrot.lane.b32.xlu0 %v3112_v26, %s3154_s0 }
0x1205   :  { %v3114_v27 = vpop.eup %3113 }
0x1206   :  { %2031 = vrot.lane.b32.xlu1 %v3114_v27, %s3154_s0 }
0x1270   :  { %v1865_v28 = vpop.permute.xlu0 %1864 }
0x1271   :  { %v1867_v36 = vmul.f32 %v3108_v17, %v1865_v28 }
0x1273   :  { %2045 = vrot.lane.b32.xlu0 %v1867_v36, %s3155_s20 }
0x1278   :  { %v2032_v29 = vpop.permute.xlu1 %2031 }
0x1279   :  { %v2034_v30 = vmul.f32 %v3110_v9, %v2032_v29  ;;  %v3151_v9 = vld [vmem:[%s3839_s8] ss:$0 sm:$0xff]  ;;  %s3156_s8 = smov 96  }
0x127b   :  { %2036 = vrot.lane.b32.xlu1 %v2034_v30, %s3155_s20 }
0x12e5   :  { %v2046_v32 = vpop.permute.xlu0 %2045 }
0x12e6   :  { %2960 = vmatmul.mubr.msk.f32.vlgmr.msra.gmra.mxu1 %vm63_vm2, %v2046_v32  ;;  %2971 = vmatmul.mubr.msk.f32.vlgmr.msra.gmra.mxu0 %vm63_vm2, %v2046_v32 }
0x12e7   :  { %2974 = vmatpush3.msra.mxu1 %v3143_v33  ;;  %2981 = vmatprep.mubr.msk.f32.mxu1 %vm3153_vm0, %v3152_v0 }
0x12e8   :  { %2975 = vmatprep.subr.mxu1 %v3152_v0  ;;  %2985 = vmatpush3.msra.mxu0 %v3144_v35 }
0x12e9   :  { %2976 = vmatpush3.msra.mxu1 %v3145_v37  ;;  %2986 = vmatprep.subr.mxu0 %v3152_v0 }
0x12ea   :  { %2977 = vmatprep.subr.mxu1 %v3152_v0  ;;  %2987 = vmatpush3.msra.mxu0 %v3146_v39 }
0x12eb   :  { %2978 = vmatpush3.msra.mxu1 %v3147_v41  ;;  %2988 = vmatprep.subr.mxu0 %v3152_v0 }
0x12ec   :  { %2979 = vmatprep.subr.mxu1 %v3152_v0  ;;  %2989 = vmatpush3.msra.mxu0 %v3148_v42 }
0x12ed   :  { %2980 = vmatpush3.msra.mxu1 %v3149_v43  ;;  %v2037_v44 = vpop.permute.xlu1 %2036  ;;  %2990 = vmatprep.subr.mxu0 %v3152_v0 }
0x12ee   :  { %2567 = vst.msk [vmem:[%s3840_s9 + $0x28] sm:$0xff] %vm63_vm2, %v2037_v44  ;;  %2982 = vmatmul.mubr.msk.f32.vlgmr.msra.gmra.mxu1 %vm63_vm2, %v2037_v44  ;;  %2991 = vmatpush3.msra.mxu0 %v3150_v45 }
0x12ef   :  { %2992 = vmatprep.mubr.msk.f32.mxu0 %vm3153_vm0, %v3152_v0  ;;  %2995 = vmatprep.subr.mxu1 %v3152_v0 }
0x12f0   :  { %2996 = vmatpush3.msra.mxu1 %v3143_v33  ;;  %3003 = vmatprep.mubr.msk.f32.mxu1 %vm3153_vm0, %v3152_v0 }
0x12f1   :  { %2997 = vmatprep.subr.mxu1 %v3152_v0 }
0x12f2   :  { %2998 = vmatpush3.msra.mxu1 %v3145_v37 }
0x12f3   :  { %2999 = vmatprep.subr.mxu1 %v3152_v0 }
0x12f4   :  { %3000 = vmatpush3.msra.mxu1 %v3147_v41 }
0x12f5   :  { %3001 = vmatprep.subr.mxu1 %v3152_v0 }
0x12f6   :  { %3002 = vmatpush3.msra.mxu1 %v3149_v43 }
0x13a6   :  { %v2115_v46 = vpop.f32.mrf.mxu1  ;;  %v2210_v38 = vpop.f32.mrf.mxu0 }
0x13a7   :  { %v2119_v47 = vadd.f32 %v2115_v46, %v3341_v40  ;;  %v2211_v50 = vadd.f32 %v3437_v6, %v2210_v38 }
0x13a8   :  { %v2961_v48 = vpop.f32.mrf.mxu1  ;;  %v2972_v49 = vpop.f32.mrf.mxu0 }
0x13a9   :  { %3115 = vtanh.f32 %v2119_v47  ;;  %v2569_v0 = vmul.f32 -1.442695, %v2119_v47 }
0x13ae   :  { %v2282_v55 = vpop.f32.mrf.mxu1 }
0x13af   :  { %v2286_v56 = vadd.f32 %v2282_v55, %v2211_v50 }
0x13b0   :  { %v2983_v57 = vpop.f32.mrf.mxu1 }
0x13b1   :  { %3117 = vtanh.f32 %v2286_v56  ;;  %v2572_v58 = vmul.f32 -1.442695, %v2286_v56 }
0x13b2   :  { %3119 = vpow2.f32 %v2569_v0 }
0x13b3   :  { %3121 = vpow2.f32 %v2572_v58 }
0x13b6   :  { %v3116_v59 = vpop.eup %3115 }
0x13b7   :  { %2129 = vrot.lane.b32.xlu0 %v3116_v59, %s3154_s0 }
0x13be   :  { %v3118_v31 = vpop.eup %3117 }
0x13bf   :  { %2296 = vrot.lane.b32.xlu1 %v3118_v31, %s3154_s0  ;;  %v3120_v40 = vpop.eup %3119 }
0x13c0   :  { %v2123_v1 = vadd.f32 1.0, %v3120_v40  ;;  %v3122_v60 = vpop.eup %3121 }
0x13c1   :  { %v2290_v61 = vadd.f32 1.0, %v3122_v60 }
0x13c2   :  { %3123 = vrcp.f32 %v2123_v1 }
0x13c3   :  { %3125 = vrcp.f32 %v2290_v61 }
0x13cf   :  { %v3124_v6 = vpop.eup %3123 }
0x13d0   :  { %v3126_v52 = vpop.eup %3125  ;;  %v2127_v4 = vmul.f32 %v3124_v6, %v3728_v21 }
0x13d1   :  { %v2294_v10 = vmul.f32 %v3126_v52, %v3732_v25 }
0x1429   :  { %v2130_v51 = vpop.permute.xlu0 %2129 }
0x142a   :  { %v2132_v62 = vmul.f32 %v3124_v6, %v2130_v51 }
0x142c   :  { %2134 = vrot.lane.b32.xlu0 %v2132_v62, %s3154_s0 }
0x1431   :  { %v2297_v2 = vpop.permute.xlu1 %2296 }
0x1432   :  { %v2299_v3 = vmul.f32 %v3126_v52, %v2297_v2 }
0x1434   :  { %2301 = vrot.lane.b32.xlu1 %v2299_v3, %s3154_s0 }
0x149e   :  { %v2135_v5 = vpop.permute.xlu0 %2134 }
0x149f   :  { %v2137_v8 = vadd.f32 %v2135_v5, %v2127_v4 }
0x14a1   :  { %3127 = vtanh.f32 %v2137_v8 }
0x14a6   :  { %v2302_v53 = vpop.permute.xlu1 %2301 }
0x14a7   :  { %v2304_v34 = vadd.f32 %v2302_v53, %v2294_v10 }
0x14a9   :  { %3129 = vtanh.f32 %v2304_v34 }
0x14ae   :  { %v3128_v54 = vpop.eup %3127 }
0x14af   :  { %2140 = vrot.lane.b32.xlu0 %v3128_v54, %s3154_s0 }
0x14b6   :  { %v3130_v11 = vpop.eup %3129 }
0x14b7   :  { %2307 = vrot.lane.b32.xlu1 %v3130_v11, %s3154_s0 }
0x1521   :  { %v2141_v23 = vpop.permute.xlu0 %2140 }
0x1522   :  { %v2143_v63 = vmul.f32 %v3124_v6, %v2141_v23 }
0x1524   :  { %2318 = vrot.lane.b32.xlu0 %v2143_v63, %s3155_s20 }
0x1529   :  { %v2308_v14 = vpop.permute.xlu1 %2307 }
0x152a   :  { %v2310_v15 = vmul.f32 %v3126_v52, %v2308_v14 }
0x152c   :  { %2312 = vrot.lane.b32.xlu1 %v2310_v15, %s3155_s20 }
0x1596   :  { %v2319_v16 = vpop.permute.xlu0 %2318 }
0x1597   :  { %2496 = vst.msk [vmem:[%s3841_s10] sm:$0xff] %vm63_vm2, %v2319_v16  ;;  %2993 = vmatmul.mubr.msk.f32.vlgmr.msra.gmra.mxu0 %vm63_vm2, %v2319_v16 }
0x159e   :  { %v2313_v17 = vpop.permute.xlu1 %2312 }
0x159f   :  { %2573 = vst.msk [vmem:[%s3840_s9 + $0x30] sm:$0xff] %vm63_vm2, %v2313_v17  ;;  %3004 = vmatmul.mubr.msk.f32.vlgmr.msra.gmra.mxu1 %vm63_vm2, %v2313_v17 }
0x1657   :  { %v2388_v18 = vpop.f32.mrf.mxu0 }
0x1658   :  { %v2389_v12 = vadd.f32 %v3151_v9, %v2388_v18 }
0x1659   :  { %v2994_v7 = vpop.f32.mrf.mxu0 }
0x165f   :  { %v2460_v13 = vpop.f32.mrf.mxu1 }
0x1660   :  { %v2464_v19 = vadd.f32 %v2460_v13, %v2389_v12 }
0x1661   :  { %v3005_v20 = vpop.f32.mrf.mxu1 }
0x1662   :  { %3131 = vtanh.f32 %v2464_v19  ;;  %v2576_v22 = vmul.f32 -1.442695, %v2464_v19 }
0x1664   :  { %3133 = vpow2.f32 %v2576_v22 }
0x166f   :  { %v3132_v21 = vpop.eup %3131 }
0x1670   :  { %2474 = vrot.lane.b32.xlu0 %v3132_v21, %s3154_s0 }
0x1671   :  { %v3134_v24 = vpop.eup %3133 }
0x1672   :  { %v2468_v25 = vadd.f32 1.0, %v3134_v24 }
0x1674   :  { %3135 = vrcp.f32 %v2468_v25 }
0x1681   :  { %v3136_v26 = vpop.eup %3135 }
0x1682   :  { %v2472_v36 = vmul.f32 %v3136_v26, %v2304_v34 }
0x16e2   :  { %v2475_v27 = vpop.permute.xlu0 %2474 }
0x16e3   :  { %v2477_v28 = vmul.f32 %v3136_v26, %v2475_v27 }
0x16e5   :  { %2479 = vrot.lane.b32.xlu1 %v2477_v28, %s3154_s0 }
0x1757   :  { %v2480_v29 = vpop.permute.xlu1 %2479 }
0x1758   :  { %v2482_v30 = vadd.f32 %v2480_v29, %v2472_v36 }
0x175a   :  { %3137 = vtanh.f32 %v2482_v30 }
0x1767   :  { %v3138_v32 = vpop.eup %3137 }
0x1768   :  { %2485 = vrot.lane.b32.xlu0 %v3138_v32, %s3154_s0 }
0x176c   :  { %2498 = vrot.lane.b32.xlu0 %v2137_v8, %s3156_s8 }
0x17da   :  { %v2486_v33 = vpop.permute.xlu0 %2485 }
0x17db   :  { %v2488_v35 = vmul.f32 %v3136_v26, %v2486_v33 }
0x17dd   :  { %2490 = vrot.lane.b32.xlu1 %v2488_v35, %s3155_s20 }
0x17de   :  { %v2499_v37 = vpop.permute.xlu0 %2498 }
0x17df   :  { %2501 = vst.msk [vmem:[%s3842_s11] sm:$0xff] %vm63_vm2, %v2499_v37 }
0x17e1   :  { %2505 = vrot.lane.b32.xlu1 %v2482_v30, %s3156_s8 }
0x184f   :  { %v2491_v39 = vpop.permute.xlu1 %2490 }
0x1850   :  { %2577 = vst.msk [vmem:[%s3840_s9 + $0x38] sm:$0xff] %vm63_vm2, %v2491_v39  ;;  %2578 = vst.msk [vmem:[%s3841_s10 + $0x8] sm:$0xff] %vm63_vm2, %v2491_v39 }
0x1853   :  { %v2506_v41 = vpop.permute.xlu1 %2505 }
0x1854   :  { %2579 = vst.msk [vmem:[%s3842_s11 + $0x8] sm:$0xff] %vm63_vm2, %v2506_v41 }

</bundles_post_ra>
